<compile_context>
chip_gen: v5e
topology: v5e:2x2
jax: 0.10.0
libtpu: 0.0.40
codegen_flags: <defaults>
</compile_context>

<pallas_src>
import functools

import jax
import jax.numpy as jnp
from jax import lax
from jax.experimental import pallas as pl
from jax.experimental.pallas import tpu as pltpu

_VMEM_LIMIT = 48 * 1024 * 1024   # fits v7x (64 MiB phys) and v5e/v6e (128 MiB)
TAG_PAD = 128                    # lane-dense width for hidden2tag projection


def _cparams(*semantics):
    return pltpu.CompilerParams(dimension_semantics=tuple(semantics),
                                vmem_limit_bytes=_VMEM_LIMIT)


def _pick_tile(m, cap=512):
    """Largest tile <= cap that divides m and is a multiple of 8 (else m itself)."""
    if m <= cap:
        return m
    t = cap - cap % 8
    while t >= 8:
        if m % t == 0:
            return t
        t -= 8
    return m


# ----------------------------------------------------------------------------
# Dense Pallas kernels (row-tiled, bf16 matmul / f32 accumulate)
# ----------------------------------------------------------------------------
def _linear_kernel(x_ref, w_ref, b_ref, o_ref, *, activation):
    y = jnp.dot(x_ref[...], w_ref[...], preferred_element_type=jnp.float32)
    y = y + b_ref[...].astype(jnp.float32)
    if activation == "gelu":
        # TODO(synk): HF/PyTorch BERT default is exact erf GELU; tanh approx kept
        # (EUP-friendly, tiny numeric drift).
        y = jax.nn.gelu(y, approximate=True)
    elif activation == "tanh":
        y = jnp.tanh(y)
    o_ref[...] = y.astype(o_ref.dtype)


def pallas_linear(x, w, b, activation=None, out_dtype=jnp.bfloat16):
    """x:[M,K] @ w:[K,N] + b:[N], rows tiled over a "parallel" grid axis."""
    M, K = x.shape
    N = w.shape[1]
    tm = _pick_tile(M)
    kern = functools.partial(_linear_kernel, activation=activation)
    return pl.pallas_call(
        kern,
        grid=(M // tm,),
        in_specs=[pl.BlockSpec((tm, K), lambda i: (i, 0)),
                  pl.BlockSpec((K, N), lambda i: (0, 0)),
                  pl.BlockSpec((1, N), lambda i: (0, 0))],
        out_specs=pl.BlockSpec((tm, N), lambda i: (i, 0)),
        out_shape=jax.ShapeDtypeStruct((M, N), out_dtype),
        compiler_params=_cparams("parallel"),
    )(x.astype(jnp.bfloat16), w.astype(jnp.bfloat16),
      b.astype(jnp.float32).reshape(1, N))


def _linear_res_ln_kernel(x_ref, res_ref, w_ref, b_ref, g_ref, beta_ref, o_ref, *, eps):
    # y = LayerNorm(res + x @ w + b)
    y = jnp.dot(x_ref[...], w_ref[...], preferred_element_type=jnp.float32)
    y = y + b_ref[...].astype(jnp.float32) + res_ref[...].astype(jnp.float32)
    mu = jnp.mean(y, axis=-1, keepdims=True)
    var = jnp.mean(jnp.square(y - mu), axis=-1, keepdims=True)
    y = (y - mu) * lax.rsqrt(var + eps)
    y = y * g_ref[...].astype(jnp.float32) + beta_ref[...].astype(jnp.float32)
    o_ref[...] = y.astype(o_ref.dtype)


def pallas_linear_res_ln(x, res, w, b, g, beta, eps=1e-12, out_dtype=jnp.bfloat16):
    """Fused projection + residual add + LayerNorm (full feature dim per block)."""
    M, K = x.shape
    N = w.shape[1]
    tm = _pick_tile(M)
    kern = functools.partial(_linear_res_ln_kernel, eps=eps)
    return pl.pallas_call(
        kern,
        grid=(M // tm,),
        in_specs=[pl.BlockSpec((tm, K), lambda i: (i, 0)),
                  pl.BlockSpec((tm, N), lambda i: (i, 0)),
                  pl.BlockSpec((K, N), lambda i: (0, 0)),
                  pl.BlockSpec((1, N), lambda i: (0, 0)),
                  pl.BlockSpec((1, N), lambda i: (0, 0)),
                  pl.BlockSpec((1, N), lambda i: (0, 0))],
        out_specs=pl.BlockSpec((tm, N), lambda i: (i, 0)),
        out_shape=jax.ShapeDtypeStruct((M, N), out_dtype),
        compiler_params=_cparams("parallel"),
    )(x.astype(jnp.bfloat16), res.astype(jnp.bfloat16),
      w.astype(jnp.bfloat16), b.astype(jnp.float32).reshape(1, N),
      g.astype(jnp.float32).reshape(1, N), beta.astype(jnp.float32).reshape(1, N))


def _layernorm_kernel(x_ref, g_ref, b_ref, o_ref, *, eps):
    x = x_ref[...].astype(jnp.float32)
    mu = jnp.mean(x, axis=-1, keepdims=True)
    var = jnp.mean(jnp.square(x - mu), axis=-1, keepdims=True)
    y = (x - mu) * lax.rsqrt(var + eps)
    y = y * g_ref[...].astype(jnp.float32) + b_ref[...].astype(jnp.float32)
    o_ref[...] = y.astype(o_ref.dtype)


def pallas_layernorm(x, g, b, eps=1e-12, out_dtype=jnp.bfloat16):
    M, H = x.shape
    tm = _pick_tile(M)
    kern = functools.partial(_layernorm_kernel, eps=eps)
    return pl.pallas_call(
        kern,
        grid=(M // tm,),
        in_specs=[pl.BlockSpec((tm, H), lambda i: (i, 0)),
                  pl.BlockSpec((1, H), lambda i: (0, 0)),
                  pl.BlockSpec((1, H), lambda i: (0, 0))],
        out_specs=pl.BlockSpec((tm, H), lambda i: (i, 0)),
        out_shape=jax.ShapeDtypeStruct((M, H), out_dtype),
        compiler_params=_cparams("parallel"),
    )(x, g.reshape(1, H), b.reshape(1, H))


# ----------------------------------------------------------------------------
# Flash-style multi-head attention: grid (B*H, kv-tiles), online softmax
# ----------------------------------------------------------------------------
def _mha_kernel(q_ref, k_ref, v_ref, bias_ref, o_ref, m_sc, l_sc, acc_sc, *, scale):
    kv = pl.program_id(1)

    @pl.when(kv == 0)
    def _():
        m_sc[...] = jnp.full_like(m_sc, -1e30)
        l_sc[...] = jnp.zeros_like(l_sc)
        acc_sc[...] = jnp.zeros_like(acc_sc)

    q = q_ref[0]            # [S, D]  bf16
    k = k_ref[0]            # [TK, D] bf16
    v = v_ref[0]            # [TK, D] bf16
    s = lax.dot_general(q, k, (((1,), (1,)), ((), ())),
                        preferred_element_type=jnp.float32) * scale   # [S, TK]
    s = s + bias_ref[0]                                               # key-padding bias

    m_prev = m_sc[...]
    m_new = jnp.maximum(m_prev, jnp.max(s, axis=-1, keepdims=True))
    alpha = jnp.exp(m_prev - m_new)
    p = jnp.exp(s - m_new)
    l_sc[...] = alpha * l_sc[...] + jnp.sum(p, axis=-1, keepdims=True)
    acc_sc[...] = alpha * acc_sc[...] + jnp.dot(p.astype(v.dtype), v,
                                                preferred_element_type=jnp.float32)
    m_sc[...] = m_new

    @pl.when(kv == pl.num_programs(1) - 1)
    def _():
        inv = pl.reciprocal(l_sc[...], approx=True)   # EUP slot, frees VALU
        o_ref[0] = (acc_sc[...] * inv).astype(o_ref.dtype)


def pallas_attention(q, k, v, bias):
    """q,k,v: [B*H, S, D] bf16; bias: [B*H, 1, S] additive (-1e9 on padding)."""
    BH, S, D = q.shape
    tk = _pick_tile(S, cap=512)
    kern = functools.partial(_mha_kernel, scale=1.0 / (D ** 0.5))
    # TODO(synk): q is kept whole per head; add a q-tile grid axis for very long S.
    return pl.pallas_call(
        kern,
        grid=(BH, S // tk),
        in_specs=[pl.BlockSpec((1, S, D), lambda bh, kv: (bh, 0, 0)),
                  pl.BlockSpec((1, tk, D), lambda bh, kv: (bh, kv, 0)),
                  pl.BlockSpec((1, tk, D), lambda bh, kv: (bh, kv, 0)),
                  pl.BlockSpec((1, 1, tk), lambda bh, kv: (bh, 0, kv))],
        out_specs=pl.BlockSpec((1, S, D), lambda bh, kv: (bh, 0, 0)),
        out_shape=jax.ShapeDtypeStruct((BH, S, D), jnp.bfloat16),
        scratch_shapes=[pltpu.VMEM((S, 1), jnp.float32),
                        pltpu.VMEM((S, 1), jnp.float32),
                        pltpu.VMEM((S, D), jnp.float32)],
        compiler_params=_cparams("parallel", "arbitrary"),
    )(q, k, v, bias)


# ----------------------------------------------------------------------------
# LSTM: whole time loop inside one kernel per direction
#   h, c live in VMEM scratch; w_hh is resident (constant index map);
#   per-step xg tiles stream in and h tiles stream out via the grid pipeline.
# ----------------------------------------------------------------------------
def _lstm_scan_kernel(xg_ref, whh_ref, h_out_ref, h_sc, c_sc):
    t = pl.program_id(0)
    H = h_sc.shape[1]

    @pl.when(t == 0)
    def _():
        h_sc[...] = jnp.zeros_like(h_sc)
        c_sc[...] = jnp.zeros_like(c_sc)

    h = h_sc[...]
    gates = xg_ref[0].astype(jnp.float32) + jnp.dot(
        h.astype(jnp.bfloat16), whh_ref[...], preferred_element_type=jnp.float32)
    # NOTE: for best lane alignment pick lstm_hidden as a multiple of 128;
    # at small H these slices are cheap anyway.
    i = jax.nn.sigmoid(gates[:, 0 * H:1 * H])
    f = jax.nn.sigmoid(gates[:, 1 * H:2 * H])
    g = jnp.tanh(gates[:, 2 * H:3 * H])
    o = jax.nn.sigmoid(gates[:, 3 * H:4 * H])
    c = f * c_sc[...] + i * g
    h_new = o * jnp.tanh(c)
    c_sc[...] = c
    h_sc[...] = h_new
    h_out_ref[0] = h_new.astype(h_out_ref.dtype)


def lstm_direction(xg, whh, reverse):
    """xg: [S, B, 4H] (x-projection incl. biases), whh: [H, 4H]. Returns [S, B, H]."""
    S, B, H4 = xg.shape
    H = H4 // 4
    if reverse:
        t_idx = lambda t: (S - 1 - t, 0, 0)
    else:
        t_idx = lambda t: (t, 0, 0)
    return pl.pallas_call(
        _lstm_scan_kernel,
        grid=(S,),
        in_specs=[pl.BlockSpec((1, B, H4), t_idx),
                  pl.BlockSpec((H, H4), lambda t: (0, 0))],
        out_specs=pl.BlockSpec((1, B, H), t_idx),
        out_shape=jax.ShapeDtypeStruct((S, B, H), jnp.float32),
        scratch_shapes=[pltpu.VMEM((B, H), jnp.float32),
                        pltpu.VMEM((B, H), jnp.float32)],
        compiler_params=_cparams("arbitrary"),
    )(xg.astype(jnp.float32), whh.astype(jnp.bfloat16))


# ----------------------------------------------------------------------------
# BERT encoder
# ----------------------------------------------------------------------------
def bert_layer(x, p, attn_bias, n_heads):
    S, B, H = x.shape
    dH = H // n_heads
    x2 = x.reshape(S * B, H)

    # fused QKV projection: one matmul, one read of x2
    qkv = pallas_linear(x2, p["wqkv"], p["bqkv"])                    # [S*B, 3H] bf16
    qkv = (qkv.reshape(S, B, 3, n_heads, dH)
              .transpose(2, 1, 3, 0, 4)
              .reshape(3, B * n_heads, S, dH))
    ctx = pallas_attention(qkv[0], qkv[1], qkv[2], attn_bias)        # [BH, S, dH]
    ctx = (ctx.reshape(B, n_heads, S, dH)
              .transpose(2, 0, 1, 3)
              .reshape(S * B, H))

    # fused attention-output projection + residual + LayerNorm1
    x2 = pallas_linear_res_ln(ctx, x2, p["wo"], p["bo"], p["ln1_g"], p["ln1_b"])
    # FFN: GELU matmul, then fused w2 + residual + LayerNorm2
    ff = pallas_linear(x2, p["w1"], p["b1"], activation="gelu")
    x2 = pallas_linear_res_ln(ff, x2, p["w2"], p["b2"], p["ln2_g"], p["ln2_b"])
    return x2.reshape(S, B, H)


def bert_encode(input_ids, attention_mask, params, cfg):
    """input_ids: [S, B]; attention_mask: [B, S] bool, True = padding token."""
    S, B = input_ids.shape
    H = cfg["hidden_size"]
    nH = cfg["num_heads"]
    position_ids = jnp.arange(S)                               # position_ids=None
    tok = jnp.take(params["tok_emb"], input_ids, axis=0)       # [S, B, H]
    pos = jnp.take(params["pos_emb"], position_ids, axis=0)[:, None, :]
    typ = params["typ_emb"][0][None, None, :]                  # token_type_ids=None -> 0
    x = tok + pos + typ
    x = pallas_layernorm(x.reshape(S * B, H),
                         params["emb_ln_g"], params["emb_ln_b"]).reshape(S, B, H)

    bias = jnp.where(attention_mask, -1e9, 0.0).astype(jnp.float32)      # [B, S]
    bias = jnp.broadcast_to(bias[:, None, None, :], (B, nH, 1, S)).reshape(B * nH, 1, S)

    for lp in params["layers"]:
        x = bert_layer(x, lp, bias, nH)
    return x   # token-level features [S, B, H] bf16


# ----------------------------------------------------------------------------
# BiLSTM feature extractor
# ----------------------------------------------------------------------------
def bilstm_features(x, params, lstm_hidden, tag_size):
    # TODO(synk): pack_padded_sequence semantics not replicated; padded positions are
    # processed by the LSTM and later masked by the CRF.
    S, B, E = x.shape
    Hl = lstm_hidden
    x2 = x.reshape(S * B, E)
    # all-timestep input projections (biases b_ih + b_hh folded into b_f/b_b)
    xg_f = pallas_linear(x2, params["wih_f"], params["b_f"],
                         out_dtype=jnp.float32).reshape(S, B, 4 * Hl)
    xg_b = pallas_linear(x2, params["wih_b"], params["b_b"],
                         out_dtype=jnp.float32).reshape(S, B, 4 * Hl)
    h_f = lstm_direction(xg_f, params["whh_f"], reverse=False)
    h_b = lstm_direction(xg_b, params["whh_b"], reverse=True)
    h = jnp.concatenate([h_f, h_b], axis=-1)                         # [S, B, 2Hl]
    h2 = pallas_layernorm(h.reshape(S * B, 2 * Hl),
                          params["ln_g"], params["ln_b"], eps=1e-5)
    # lane-dense hidden2tag: weight padded to 128 output lanes, slice afterwards
    feats = pallas_linear(h2, params["w_tag"], params["b_tag"], out_dtype=jnp.float32)
    feats = feats[:, :tag_size]
    return feats.reshape(S, B, tag_size)


# ----------------------------------------------------------------------------
# CRF (tag_size=5 DP kept in lax.scan — far too tiny for a kernel)
# ----------------------------------------------------------------------------
def crf_nll(emissions, tags, mask, crf_p):
    trans, start_t, end_t = crf_p["trans"], crf_p["start"], crf_p["end"]
    B, S, T = emissions.shape
    maskf = mask.astype(jnp.float32)
    b_idx = jnp.arange(B)

    # gold path score
    score = start_t[tags[:, 0]] + emissions[b_idx, 0, tags[:, 0]]

    def sbody(score, inp):
        tprev, tcur, emit, m = inp
        s = trans[tprev, tcur] + emit[b_idx, tcur]
        return score + s * m, None

    score, _ = lax.scan(sbody, score,
                        (tags[:, :-1].T, tags[:, 1:].T,
                         emissions[:, 1:].transpose(1, 0, 2), maskf[:, 1:].T))
    seq_len = jnp.sum(maskf, axis=1).astype(jnp.int32)
    last_tags = tags[b_idx, seq_len - 1]
    score = score + end_t[last_tags]

    # log partition function
    alpha = start_t[None, :] + emissions[:, 0]

    def abody(alpha, inp):
        emit, m = inp
        cand = alpha[:, :, None] + trans[None, :, :] + emit[:, None, :]
        new_alpha = jax.scipy.special.logsumexp(cand, axis=1)
        return jnp.where(m[:, None] > 0, new_alpha, alpha), None

    alpha, _ = lax.scan(abody, alpha,
                        (emissions[:, 1:].transpose(1, 0, 2), maskf[:, 1:].T))
    log_z = jax.scipy.special.logsumexp(alpha + end_t[None, :], axis=-1)
    return jnp.mean(log_z - score)


def crf_viterbi(emissions, mask, crf_p):
    trans, start_t, end_t = crf_p["trans"], crf_p["start"], crf_p["end"]
    B, S, T = emissions.shape
    maskf = mask.astype(jnp.float32)
    score = start_t[None, :] + emissions[:, 0]
    ident = jnp.broadcast_to(jnp.arange(T, dtype=jnp.int32)[None, :], (B, T))

    def step(score, inp):
        emit, m = inp
        cand = score[:, :, None] + trans[None, :, :]
        best_prev = jnp.argmax(cand, axis=1).astype(jnp.int32)
        best_score = jnp.max(cand, axis=1) + emit
        new_score = jnp.where(m[:, None] > 0, best_score, score)
        bp = jnp.where(m[:, None] > 0, best_prev, ident)
        return new_score, bp

    scores, backptrs = lax.scan(step, score,
                                (emissions[:, 1:].transpose(1, 0, 2), maskf[:, 1:].T))
    last_tag = jnp.argmax(scores + end_t[None, :], axis=-1).astype(jnp.int32)

    def back(tag_next, bp):
        prev = jnp.take_along_axis(bp, tag_next[:, None], axis=1)[:, 0]
        return prev, tag_next

    first_tag, tags_rest = lax.scan(back, last_tag, backptrs, reverse=True)
    path = jnp.concatenate([first_tag[None, :], tags_rest], axis=0).transpose(1, 0)
    return jnp.where(mask, path, 0)


# ----------------------------------------------------------------------------
# Full BertForNER forward
# ----------------------------------------------------------------------------
def bert_for_ner_forward(params, cfg, input_ids, attention_mask, labels, is_test=False):
    seq_out = bert_encode(input_ids, attention_mask, params["bert"], cfg)
    # nn.Dropout -> identity (eval mode; deterministic kernel)
    feats = bilstm_features(seq_out, params["bilstm"],
                            cfg["lstm_hidden"], cfg["labels_num"])   # [S, B, T] f32
    emissions = feats.transpose(1, 0, 2)                             # [B, S, T]
    tags = labels.transpose(1, 0)                                    # [B, S]
    label_mask = ~attention_mask                                     # True = real token
    if not is_test:
        loss = crf_nll(emissions, tags, label_mask, params["crf"])
        decoded = crf_viterbi(emissions, label_mask, params["crf"])
        return loss, decoded
    return crf_viterbi(emissions, label_mask, params["crf"])


# ----------------------------------------------------------------------------
# Deterministic parameter init
# ----------------------------------------------------------------------------
def init_params(key, cfg):
    H = cfg["hidden_size"]
    I = cfg["intermediate_size"]
    Hl = cfg["lstm_hidden"]
    T = cfg["labels_num"]
    keys = iter(jax.random.split(key, 128))

    def nrm(shape, scale=0.02):
        return scale * jax.random.normal(next(keys), shape, jnp.float32)

    bert = {
        "tok_emb": nrm((cfg["vocab_size"], H)),
        "pos_emb": nrm((cfg["max_pos"], H)),
        "typ_emb": nrm((2, H)),
        "emb_ln_g": jnp.ones((H,), jnp.float32),
        "emb_ln_b": jnp.zeros((H,), jnp.float32),
        "layers": [],
    }
    for _ in range(cfg["num_layers_bert"]):
        bert["layers"].append({
            "wqkv": nrm((H, 3 * H)), "bqkv": jnp.zeros((3 * H,), jnp.float32),
            "wo": nrm((H, H)), "bo": jnp.zeros((H,), jnp.float32),
            "ln1_g": jnp.ones((H,), jnp.float32), "ln1_b": jnp.zeros((H,), jnp.float32),
            "w1": nrm((H, I)), "b1": jnp.zeros((I,), jnp.float32),
            "w2": nrm((I, H)), "b2": jnp.zeros((H,), jnp.float32),
            "ln2_g": jnp.ones((H,), jnp.float32), "ln2_b": jnp.zeros((H,), jnp.float32),
        })

    # hidden2tag weights padded to TAG_PAD output lanes (lane-dense stores)
    w_tag = jnp.zeros((2 * Hl, TAG_PAD), jnp.float32).at[:, :T].set(nrm((2 * Hl, T)))
    b_tag = jnp.zeros((TAG_PAD,), jnp.float32)

    bilstm = {
        "wih_f": nrm((H, 4 * Hl)), "whh_f": nrm((Hl, 4 * Hl)),
        "b_f": nrm((4 * Hl,)),      # represents b_ih + b_hh folded together
        "wih_b": nrm((H, 4 * Hl)), "whh_b": nrm((Hl, 4 * Hl)),
        "b_b": nrm((4 * Hl,)),
        "ln_g": jnp.ones((2 * Hl,), jnp.float32),
        "ln_b": jnp.zeros((2 * Hl,), jnp.float32),
        "w_tag": w_tag, "b_tag": b_tag,
    }

    crf = {
        "trans": nrm((T, T), scale=0.1),
        "start": nrm((T,), scale=0.1),
        "end": nrm((T,), scale=0.1),
    }
    return {"bert": bert, "bilstm": bilstm, "crf": crf}


# ----------------------------------------------------------------------------
if __name__ == "__main__":
    cfg = dict(vocab_size=100, hidden_size=32, num_heads=2, intermediate_size=64,
               max_pos=64, num_layers_bert=2, lstm_hidden=16, labels_num=5)
    S, B = 8, 2   # src_len, batch_size

    key = jax.random.PRNGKey(0)
    kp, kid, klab = jax.random.split(key, 3)
    params = init_params(kp, cfg)

    input_ids = jax.random.randint(kid, (S, B), 0, cfg["vocab_size"], dtype=jnp.int32)
    # attention_mask: [batch, src_len] bool, True = PADDING (key_padding_mask convention)
    attention_mask = jnp.zeros((B, S), dtype=bool).at[1, 6:].set(True)
    labels = jax.random.randint(klab, (S, B), 0, cfg["labels_num"], dtype=jnp.int32)

    fwd = jax.jit(lambda p, ids, am, lab: bert_for_ner_forward(p, cfg, ids, am, lab,
                                                               is_test=False))
    loss, decoded = fwd(params, input_ids, attention_mask, labels)
    jax.block_until_ready((loss, decoded))
    assert decoded.shape == (B, S)
    assert jnp.isfinite(loss)
    print("KERNEL_OK")
</pallas_src>

<mosaic_0001>
module attributes {stable_mosaic.version = 11 : i64} {
  func.func @_linear_kernel(%arg0: i32, %arg1: memref<16x32xbf16, #tpu.memory_space<vmem>>, %arg2: memref<32x96xbf16, #tpu.memory_space<vmem>>, %arg3: memref<1x96xf32, #tpu.memory_space<vmem>>, %arg4: memref<16x96xbf16, #tpu.memory_space<vmem>>) attributes {dimension_semantics = [#tpu.dimension_semantics<parallel>], iteration_bounds = array<i64: 1>, scalar_prefetch = 0 : i64, scratch_operands = 0 : i64, tpu.core_type = #tpu.core_type<tc>, window_params = [{transform_indices = @transform_0, window_bounds = array<i64: 16, 32>}, {pipeline_mode = #tpu.pipeline_mode<synchronous>, transform_indices = @transform_1, window_bounds = array<i64: 32, 96>}, {pipeline_mode = #tpu.pipeline_mode<synchronous>, transform_indices = @transform_2, window_bounds = array<i64: 1, 96>}, {transform_indices = @transform_3, window_bounds = array<i64: 16, 96>}]} {
    %c0 = arith.constant 0 : index
    %c0_0 = arith.constant 0 : index
    %0 = vector.load %arg1[%c0, %c0_0] : memref<16x32xbf16, #tpu.memory_space<vmem>>, vector<16x32xbf16>
    %c0_1 = arith.constant 0 : index
    %c0_2 = arith.constant 0 : index
    %1 = vector.load %arg2[%c0_1, %c0_2] : memref<32x96xbf16, #tpu.memory_space<vmem>>, vector<32x96xbf16>
    %cst = arith.constant dense<0.000000e+00> : vector<16x96xf32>
    %2 = tpu.matmul %0, %1, %cst {dimension_numbers = #tpu.dot_dimension_numbers<[1], [0], [0], [1], [0, 0, 1, 1], [], []>} : vector<16x32xbf16>, vector<32x96xbf16>, vector<16x96xf32> -> vector<16x96xf32>
    %c0_3 = arith.constant 0 : index
    %c0_4 = arith.constant 0 : index
    %3 = vector.load %arg3[%c0_3, %c0_4] : memref<1x96xf32, #tpu.memory_space<vmem>>, vector<1x96xf32>
    %4 = vector.broadcast %3 : vector<1x96xf32> to vector<16x96xf32>
    %5 = arith.addf %2, %4 : vector<16x96xf32>
    %6 = arith.truncf %5 : vector<16x96xf32> to vector<16x96xbf16>
    %c0_5 = arith.constant 0 : index
    %c0_6 = arith.constant 0 : index
    %7 = vector.load %arg4[%c0_5, %c0_6] : memref<16x96xbf16, #tpu.memory_space<vmem>>, vector<16x96xbf16>
    tpu.vector_store %arg4[%c0_5, %c0_6], %6 {strides = array<i32>} : memref<16x96xbf16, #tpu.memory_space<vmem>>, vector<16x96xbf16>,
    return
  }
  func.func @transform_0(%arg0: i32) -> (i32, i32) {
    %c0_i32 = arith.constant 0 : i32
    %c0_i32_0 = arith.constant 0 : i32
    return %arg0, %c0_i32 : i32, i32
  }
  func.func @transform_1(%arg0: i32) -> (i32, i32) {
    %c0_i32 = arith.constant 0 : i32
    %c0_i32_0 = arith.constant 0 : i32
    %c0_i32_1 = arith.constant 0 : i32
    return %c0_i32, %c0_i32_0 : i32, i32
  }
  func.func @transform_2(%arg0: i32) -> (i32, i32) {
    %c0_i32 = arith.constant 0 : i32
    %c0_i32_0 = arith.constant 0 : i32
    %c0_i32_1 = arith.constant 0 : i32
    return %c0_i32, %c0_i32_0 : i32, i32
  }
  func.func @transform_3(%arg0: i32) -> (i32, i32) {
    %c0_i32 = arith.constant 0 : i32
    %c0_i32_0 = arith.constant 0 : i32
    return %arg0, %c0_i32 : i32, i32
  }
}

module attributes {stable_mosaic.version = 11 : i64} {
  func.func @_layernorm_kernel(%arg0: i32, %arg1: memref<16x32xf32, #tpu.memory_space<vmem>>, %arg2: memref<1x32xf32, #tpu.memory_space<vmem>>, %arg3: memref<1x32xf32, #tpu.memory_space<vmem>>, %arg4: memref<16x32xbf16, #tpu.memory_space<vmem>>) attributes {dimension_semantics = [#tpu.dimension_semantics<parallel>], iteration_bounds = array<i64: 1>, scalar_prefetch = 0 : i64, scratch_operands = 0 : i64, tpu.core_type = #tpu.core_type<tc>, window_params = [{transform_indices = @transform_0, window_bounds = array<i64: 16, 32>}, {pipeline_mode = #tpu.pipeline_mode<synchronous>, transform_indices = @transform_1, window_bounds = array<i64: 1, 32>}, {pipeline_mode = #tpu.pipeline_mode<synchronous>, transform_indices = @transform_2, window_bounds = array<i64: 1, 32>}, {transform_indices = @transform_3, window_bounds = array<i64: 16, 32>}]} {
    %c0 = arith.constant 0 : index
    %c0_0 = arith.constant 0 : index
    %0 = vector.load %arg1[%c0, %c0_0] : memref<16x32xf32, #tpu.memory_space<vmem>>, vector<16x32xf32>
    %cst = arith.constant dense<0.000000e+00> : vector<16xf32>
    %1 = vector.multi_reduction <add>, %0, %cst [1] : vector<16x32xf32> to vector<16xf32>
    %2 = vector.shape_cast %1 : vector<16xf32> to vector<16x1xf32>
    %cst_1 = arith.constant 3.200000e+01 : f32
    %3 = vector.broadcast %cst_1 : f32 to vector<16x1xf32>
    %4 = arith.divf %2, %3 : vector<16x1xf32>
    %5 = vector.broadcast %4 : vector<16x1xf32> to vector<16x32xf32>
    %6 = arith.subf %0, %5 : vector<16x32xf32>
    %7 = arith.mulf %6, %6 : vector<16x32xf32>
    %cst_2 = arith.constant dense<0.000000e+00> : vector<16xf32>
    %8 = vector.multi_reduction <add>, %7, %cst_2 [1] : vector<16x32xf32> to vector<16xf32>
    %9 = vector.shape_cast %8 : vector<16xf32> to vector<16x1xf32>
    %cst_3 = arith.constant 3.200000e+01 : f32
    %10 = vector.broadcast %cst_3 : f32 to vector<16x1xf32>
    %11 = arith.divf %9, %10 : vector<16x1xf32>
    %12 = vector.broadcast %4 : vector<16x1xf32> to vector<16x32xf32>
    %13 = arith.subf %0, %12 : vector<16x32xf32>
    %cst_4 = arith.constant 9.99999996E-13 : f32
    %14 = vector.broadcast %cst_4 : f32 to vector<16x1xf32>
    %15 = arith.addf %11, %14 : vector<16x1xf32>
    %16 = math.rsqrt %15 : vector<16x1xf32>
    %17 = vector.broadcast %16 : vector<16x1xf32> to vector<16x32xf32>
    %18 = arith.mulf %13, %17 : vector<16x32xf32>
    %c0_5 = arith.constant 0 : index
    %c0_6 = arith.constant 0 : index
    %19 = vector.load %arg2[%c0_5, %c0_6] : memref<1x32xf32, #tpu.memory_space<vmem>>, vector<1x32xf32>
    %20 = vector.broadcast %19 : vector<1x32xf32> to vector<16x32xf32>
    %21 = arith.mulf %18, %20 : vector<16x32xf32>
    %c0_7 = arith.constant 0 : index
    %c0_8 = arith.constant 0 : index
    %22 = vector.load %arg3[%c0_7, %c0_8] : memref<1x32xf32, #tpu.memory_space<vmem>>, vector<1x32xf32>
    %23 = vector.broadcast %22 : vector<1x32xf32> to vector<16x32xf32>
    %24 = arith.addf %21, %23 : vector<16x32xf32>
    %25 = arith.truncf %24 : vector<16x32xf32> to vector<16x32xbf16>
    %c0_9 = arith.constant 0 : index
    %c0_10 = arith.constant 0 : index
    %26 = vector.load %arg4[%c0_9, %c0_10] : memref<16x32xbf16, #tpu.memory_space<vmem>>, vector<16x32xbf16>
    tpu.vector_store %arg4[%c0_9, %c0_10], %25 {strides = array<i32>} : memref<16x32xbf16, #tpu.memory_space<vmem>>, vector<16x32xbf16>,
    return
  }
  func.func @transform_0(%arg0: i32) -> (i32, i32) {
    %c0_i32 = arith.constant 0 : i32
    %c0_i32_0 = arith.constant 0 : i32
    return %arg0, %c0_i32 : i32, i32
  }
  func.func @transform_1(%arg0: i32) -> (i32, i32) {
    %c0_i32 = arith.constant 0 : i32
    %c0_i32_0 = arith.constant 0 : i32
    %c0_i32_1 = arith.constant 0 : i32
    return %c0_i32, %c0_i32_0 : i32, i32
  }
  func.func @transform_2(%arg0: i32) -> (i32, i32) {
    %c0_i32 = arith.constant 0 : i32
    %c0_i32_0 = arith.constant 0 : i32
    %c0_i32_1 = arith.constant 0 : i32
    return %c0_i32, %c0_i32_0 : i32, i32
  }
  func.func @transform_3(%arg0: i32) -> (i32, i32) {
    %c0_i32 = arith.constant 0 : i32
    %c0_i32_0 = arith.constant 0 : i32
    return %arg0, %c0_i32 : i32, i32
  }
}

module attributes {stable_mosaic.version = 11 : i64} {
  func.func @_mha_kernel(%arg0: i32, %arg1: i32, %arg2: memref<1x8x16xbf16, #tpu.memory_space<vmem>>, %arg3: memref<1x8x16xbf16, #tpu.memory_space<vmem>>, %arg4: memref<1x8x16xbf16, #tpu.memory_space<vmem>>, %arg5: memref<1x1x8xf32, #tpu.memory_space<vmem>>, %arg6: memref<1x8x16xbf16, #tpu.memory_space<vmem>>, %arg7: memref<8x1xf32, #tpu.memory_space<vmem>>, %arg8: memref<8x1xf32, #tpu.memory_space<vmem>>, %arg9: memref<8x16xf32, #tpu.memory_space<vmem>>) attributes {dimension_semantics = [#tpu.dimension_semantics<parallel>, #tpu.dimension_semantics<arbitrary>], iteration_bounds = array<i64: 4, 1>, scalar_prefetch = 0 : i64, scratch_operands = 3 : i64, tpu.core_type = #tpu.core_type<tc>, window_params = [{transform_indices = @transform_0, window_bounds = array<i64: 1, 8, 16>}, {transform_indices = @transform_1, window_bounds = array<i64: 1, 8, 16>}, {transform_indices = @transform_2, window_bounds = array<i64: 1, 8, 16>}, {transform_indices = @transform_3, window_bounds = array<i64: 1, 1, 8>}, {transform_indices = @transform_4, window_bounds = array<i64: 1, 8, 16>}]} {
    %c0_i32 = arith.constant 0 : i32
    %0 = arith.cmpi eq, %arg1, %c0_i32 : i32
    %1 = arith.extui %0 : i1 to i32
    %c0_i32_0 = arith.constant 0 : i32
    %2 = arith.cmpi ne, %1, %c0_i32_0 : i32
    scf.if %2 {
      %cst_30 = arith.constant -1.000000e+30 : f32
      %42 = vector.broadcast %cst_30 : f32 to vector<8x1xf32>
      %c0_31 = arith.constant 0 : index
      %c0_32 = arith.constant 0 : index
      %43 = vector.load %arg7[%c0_31, %c0_32] : memref<8x1xf32, #tpu.memory_space<vmem>>, vector<8x1xf32>
      tpu.vector_store %arg7[%c0_31, %c0_32], %42 {strides = array<i32>} : memref<8x1xf32, #tpu.memory_space<vmem>>, vector<8x1xf32>,
      %cst_33 = arith.constant 0.000000e+00 : f32
      %44 = vector.broadcast %cst_33 : f32 to vector<8x1xf32>
      %c0_34 = arith.constant 0 : index
      %c0_35 = arith.constant 0 : index
      %45 = vector.load %arg8[%c0_34, %c0_35] : memref<8x1xf32, #tpu.memory_space<vmem>>, vector<8x1xf32>
      tpu.vector_store %arg8[%c0_34, %c0_35], %44 {strides = array<i32>} : memref<8x1xf32, #tpu.memory_space<vmem>>, vector<8x1xf32>,
      %cst_36 = arith.constant 0.000000e+00 : f32
      %46 = vector.broadcast %cst_36 : f32 to vector<8x16xf32>
      %c0_37 = arith.constant 0 : index
      %c0_38 = arith.constant 0 : index
      %47 = vector.load %arg9[%c0_37, %c0_38] : memref<8x16xf32, #tpu.memory_space<vmem>>, vector<8x16xf32>
      tpu.vector_store %arg9[%c0_37, %c0_38], %46 {strides = array<i32>} : memref<8x16xf32, #tpu.memory_space<vmem>>, vector<8x16xf32>,
    } else {
    }
    %c0 = arith.constant 0 : index
    %c0_1 = arith.constant 0 : index
    %c0_2 = arith.constant 0 : index
    %3 = vector.load %arg2[%c0, %c0_1, %c0_2] : memref<1x8x16xbf16, #tpu.memory_space<vmem>>, vector<1x8x16xbf16>
    %4 = vector.shape_cast %3 : vector<1x8x16xbf16> to vector<8x16xbf16>
    %c0_3 = arith.constant 0 : index
    %c0_4 = arith.constant 0 : index
    %c0_5 = arith.constant 0 : index
    %5 = vector.load %arg3[%c0_3, %c0_4, %c0_5] : memref<1x8x16xbf16, #tpu.memory_space<vmem>>, vector<1x8x16xbf16>
    %6 = vector.shape_cast %5 : vector<1x8x16xbf16> to vector<8x16xbf16>
    %c0_6 = arith.constant 0 : index
    %c0_7 = arith.constant 0 : index
    %c0_8 = arith.constant 0 : index
    %7 = vector.load %arg4[%c0_6, %c0_7, %c0_8] : memref<1x8x16xbf16, #tpu.memory_space<vmem>>, vector<1x8x16xbf16>
    %8 = vector.shape_cast %7 : vector<1x8x16xbf16> to vector<8x16xbf16>
    %cst = arith.constant dense<0.000000e+00> : vector<8x8xf32>
    %9 = tpu.matmul %4, %6, %cst {dimension_numbers = #tpu.dot_dimension_numbers<[1], [1], [0], [0], [0, 0, 1, 0], [], []>} : vector<8x16xbf16>, vector<8x16xbf16>, vector<8x8xf32> -> vector<8x8xf32>
    %cst_9 = arith.constant 2.500000e-01 : f32
    %10 = vector.broadcast %cst_9 : f32 to vector<8x8xf32>
    %11 = arith.mulf %9, %10 : vector<8x8xf32>
    %c0_10 = arith.constant 0 : index
    %c0_11 = arith.constant 0 : index
    %c0_12 = arith.constant 0 : index
    %12 = vector.load %arg5[%c0_10, %c0_11, %c0_12] : memref<1x1x8xf32, #tpu.memory_space<vmem>>, vector<1x1x8xf32>
    %13 = vector.shape_cast %12 : vector<1x1x8xf32> to vector<1x8xf32>
    %14 = vector.broadcast %13 : vector<1x8xf32> to vector<8x8xf32>
    %15 = arith.addf %11, %14 : vector<8x8xf32>
    %c0_13 = arith.constant 0 : index
    %c0_14 = arith.constant 0 : index
    %16 = vector.load %arg7[%c0_13, %c0_14] : memref<8x1xf32, #tpu.memory_space<vmem>>, vector<8x1xf32>
    %cst_15 = arith.constant dense<0xFF800000> : vector<8xf32>
    %17 = vector.multi_reduction <maximumf>, %15, %cst_15 [1] : vector<8x8xf32> to vector<8xf32>
    %18 = vector.shape_cast %17 : vector<8xf32> to vector<8x1xf32>
    %19 = arith.maximumf %16, %18 : vector<8x1xf32>
    %20 = arith.subf %16, %19 : vector<8x1xf32>
    %21 = math.exp %20 : vector<8x1xf32>
    %22 = vector.broadcast %19 : vector<8x1xf32> to vector<8x8xf32>
    %23 = arith.subf %15, %22 : vector<8x8xf32>
    %24 = math.exp %23 : vector<8x8xf32>
    %c0_16 = arith.constant 0 : index
    %c0_17 = arith.constant 0 : index
    %25 = vector.load %arg8[%c0_16, %c0_17] : memref<8x1xf32, #tpu.memory_space<vmem>>, vector<8x1xf32>
    %26 = arith.mulf %21, %25 : vector<8x1xf32>
    %cst_18 = arith.constant dense<0.000000e+00> : vector<8xf32>
    %27 = vector.multi_reduction <add>, %24, %cst_18 [1] : vector<8x8xf32> to vector<8xf32>
    %28 = vector.shape_cast %27 : vector<8xf32> to vector<8x1xf32>
    %29 = arith.addf %26, %28 : vector<8x1xf32>
    %c0_19 = arith.constant 0 : index
    %c0_20 = arith.constant 0 : index
    %30 = vector.load %arg8[%c0_19, %c0_20] : memref<8x1xf32, #tpu.memory_space<vmem>>, vector<8x1xf32>
    tpu.vector_store %arg8[%c0_19, %c0_20], %29 {strides = array<i32>} : memref<8x1xf32, #tpu.memory_space<vmem>>, vector<8x1xf32>,
    %c0_21 = arith.constant 0 : index
    %c0_22 = arith.constant 0 : index
    %31 = vector.load %arg9[%c0_21, %c0_22] : memref<8x16xf32, #tpu.memory_space<vmem>>, vector<8x16xf32>
    %32 = vector.broadcast %21 : vector<8x1xf32> to vector<8x16xf32>
    %33 = arith.mulf %32, %31 : vector<8x16xf32>
    %34 = arith.truncf %24 : vector<8x8xf32> to vector<8x8xbf16>
    %cst_23 = arith.constant dense<0.000000e+00> : vector<8x16xf32>
    %35 = tpu.matmul %34, %8, %cst_23 {dimension_numbers = #tpu.dot_dimension_numbers<[1], [0], [0], [1], [0, 0, 1, 1], [], []>} : vector<8x8xbf16>, vector<8x16xbf16>, vector<8x16xf32> -> vector<8x16xf32>
    %36 = arith.addf %33, %35 : vector<8x16xf32>
    %c0_24 = arith.constant 0 : index
    %c0_25 = arith.constant 0 : index
    %37 = vector.load %arg9[%c0_24, %c0_25] : memref<8x16xf32, #tpu.memory_space<vmem>>, vector<8x16xf32>
    tpu.vector_store %arg9[%c0_24, %c0_25], %36 {strides = array<i32>} : memref<8x16xf32, #tpu.memory_space<vmem>>, vector<8x16xf32>,
    %c0_26 = arith.constant 0 : index
    %c0_27 = arith.constant 0 : index
    %38 = vector.load %arg7[%c0_26, %c0_27] : memref<8x1xf32, #tpu.memory_space<vmem>>, vector<8x1xf32>
    tpu.vector_store %arg7[%c0_26, %c0_27], %19 {strides = array<i32>} : memref<8x1xf32, #tpu.memory_space<vmem>>, vector<8x1xf32>,
    %c0_i32_28 = arith.constant 0 : i32
    %39 = arith.cmpi eq, %arg1, %c0_i32_28 : i32
    %40 = arith.extui %39 : i1 to i32
    %c0_i32_29 = arith.constant 0 : i32
    %41 = arith.cmpi ne, %40, %c0_i32_29 : i32
    scf.if %41 {
      %c0_30 = arith.constant 0 : index
      %c0_31 = arith.constant 0 : index
      %42 = vector.load %arg8[%c0_30, %c0_31] : memref<8x1xf32, #tpu.memory_space<vmem>>, vector<8x1xf32>
      %43 = tpu.reciprocal %42 {approx = true} : vector<8x1xf32> -> vector<8x1xf32>
      %c0_32 = arith.constant 0 : index
      %c0_33 = arith.constant 0 : index
      %44 = vector.load %arg9[%c0_32, %c0_33] : memref<8x16xf32, #tpu.memory_space<vmem>>, vector<8x16xf32>
      %45 = vector.broadcast %43 : vector<8x1xf32> to vector<8x16xf32>
      %46 = arith.mulf %44, %45 : vector<8x16xf32>
      %47 = arith.truncf %46 : vector<8x16xf32> to vector<8x16xbf16>
      %c0_34 = arith.constant 0 : index
      %c0_35 = arith.constant 0 : index
      %c0_36 = arith.constant 0 : index
      %48 = vector.load %arg6[%c0_34, %c0_35, %c0_36] : memref<1x8x16xbf16, #tpu.memory_space<vmem>>, vector<1x8x16xbf16>
      %49 = vector.shape_cast %48 : vector<1x8x16xbf16> to vector<8x16xbf16>
      %50 = vector.shape_cast %47 : vector<8x16xbf16> to vector<1x8x16xbf16>
      tpu.vector_store %arg6[%c0_34, %c0_35, %c0_36], %50 {strides = array<i32>} : memref<1x8x16xbf16, #tpu.memory_space<vmem>>, vector<1x8x16xbf16>,
    } else {
    }
    return
  }
  func.func @transform_0(%arg0: i32, %arg1: i32) -> (i32, i32, i32) {
    %c0_i32 = arith.constant 0 : i32
    %c0_i32_0 = arith.constant 0 : i32
    %c0_i32_1 = arith.constant 0 : i32
    return %arg0, %c0_i32, %c0_i32_0 : i32, i32, i32
  }
  func.func @transform_1(%arg0: i32, %arg1: i32) -> (i32, i32, i32) {
    %c0_i32 = arith.constant 0 : i32
    %c0_i32_0 = arith.constant 0 : i32
    return %arg0, %arg1, %c0_i32 : i32, i32, i32
  }
  func.func @transform_2(%arg0: i32, %arg1: i32) -> (i32, i32, i32) {
    %c0_i32 = arith.constant 0 : i32
    %c0_i32_0 = arith.constant 0 : i32
    return %arg0, %arg1, %c0_i32 : i32, i32, i32
  }
  func.func @transform_3(%arg0: i32, %arg1: i32) -> (i32, i32, i32) {
    %c0_i32 = arith.constant 0 : i32
    %c0_i32_0 = arith.constant 0 : i32
    return %arg0, %c0_i32, %arg1 : i32, i32, i32
  }
  func.func @transform_4(%arg0: i32, %arg1: i32) -> (i32, i32, i32) {
    %c0_i32 = arith.constant 0 : i32
    %c0_i32_0 = arith.constant 0 : i32
    %c0_i32_1 = arith.constant 0 : i32
    return %arg0, %c0_i32, %c0_i32_0 : i32, i32, i32
  }
}

module attributes {stable_mosaic.version = 11 : i64} {
  func.func @_linear_res_ln_kernel(%arg0: i32, %arg1: memref<16x32xbf16, #tpu.memory_space<vmem>>, %arg2: memref<16x32xbf16, #tpu.memory_space<vmem>>, %arg3: memref<32x32xbf16, #tpu.memory_space<vmem>>, %arg4: memref<1x32xf32, #tpu.memory_space<vmem>>, %arg5: memref<1x32xf32, #tpu.memory_space<vmem>>, %arg6: memref<1x32xf32, #tpu.memory_space<vmem>>, %arg7: memref<16x32xbf16, #tpu.memory_space<vmem>>) attributes {dimension_semantics = [#tpu.dimension_semantics<parallel>], iteration_bounds = array<i64: 1>, scalar_prefetch = 0 : i64, scratch_operands = 0 : i64, tpu.core_type = #tpu.core_type<tc>, window_params = [{transform_indices = @transform_0, window_bounds = array<i64: 16, 32>}, {transform_indices = @transform_1, window_bounds = array<i64: 16, 32>}, {pipeline_mode = #tpu.pipeline_mode<synchronous>, transform_indices = @transform_2, window_bounds = array<i64: 32, 32>}, {pipeline_mode = #tpu.pipeline_mode<synchronous>, transform_indices = @transform_3, window_bounds = array<i64: 1, 32>}, {pipeline_mode = #tpu.pipeline_mode<synchronous>, transform_indices = @transform_4, window_bounds = array<i64: 1, 32>}, {pipeline_mode = #tpu.pipeline_mode<synchronous>, transform_indices = @transform_5, window_bounds = array<i64: 1, 32>}, {transform_indices = @transform_6, window_bounds = array<i64: 16, 32>}]} {
    %c0 = arith.constant 0 : index
    %c0_0 = arith.constant 0 : index
    %0 = vector.load %arg1[%c0, %c0_0] : memref<16x32xbf16, #tpu.memory_space<vmem>>, vector<16x32xbf16>
    %c0_1 = arith.constant 0 : index
    %c0_2 = arith.constant 0 : index
    %1 = vector.load %arg3[%c0_1, %c0_2] : memref<32x32xbf16, #tpu.memory_space<vmem>>, vector<32x32xbf16>
    %cst = arith.constant dense<0.000000e+00> : vector<16x32xf32>
    %2 = tpu.matmul %0, %1, %cst {dimension_numbers = #tpu.dot_dimension_numbers<[1], [0], [0], [1], [0, 0, 1, 1], [], []>} : vector<16x32xbf16>, vector<32x32xbf16>, vector<16x32xf32> -> vector<16x32xf32>
    %c0_3 = arith.constant 0 : index
    %c0_4 = arith.constant 0 : index
    %3 = vector.load %arg4[%c0_3, %c0_4] : memref<1x32xf32, #tpu.memory_space<vmem>>, vector<1x32xf32>
    %4 = vector.broadcast %3 : vector<1x32xf32> to vector<16x32xf32>
    %5 = arith.addf %2, %4 : vector<16x32xf32>
    %c0_5 = arith.constant 0 : index
    %c0_6 = arith.constant 0 : index
    %6 = vector.load %arg2[%c0_5, %c0_6] : memref<16x32xbf16, #tpu.memory_space<vmem>>, vector<16x32xbf16>
    %7 = arith.extf %6 : vector<16x32xbf16> to vector<16x32xf32>
    %8 = arith.addf %5, %7 : vector<16x32xf32>
    %cst_7 = arith.constant dense<0.000000e+00> : vector<16xf32>
    %9 = vector.multi_reduction <add>, %8, %cst_7 [1] : vector<16x32xf32> to vector<16xf32>
    %10 = vector.shape_cast %9 : vector<16xf32> to vector<16x1xf32>
    %cst_8 = arith.constant 3.200000e+01 : f32
    %11 = vector.broadcast %cst_8 : f32 to vector<16x1xf32>
    %12 = arith.divf %10, %11 : vector<16x1xf32>
    %13 = vector.broadcast %12 : vector<16x1xf32> to vector<16x32xf32>
    %14 = arith.subf %8, %13 : vector<16x32xf32>
    %15 = arith.mulf %14, %14 : vector<16x32xf32>
    %cst_9 = arith.constant dense<0.000000e+00> : vector<16xf32>
    %16 = vector.multi_reduction <add>, %15, %cst_9 [1] : vector<16x32xf32> to vector<16xf32>
    %17 = vector.shape_cast %16 : vector<16xf32> to vector<16x1xf32>
    %cst_10 = arith.constant 3.200000e+01 : f32
    %18 = vector.broadcast %cst_10 : f32 to vector<16x1xf32>
    %19 = arith.divf %17, %18 : vector<16x1xf32>
    %20 = vector.broadcast %12 : vector<16x1xf32> to vector<16x32xf32>
    %21 = arith.subf %8, %20 : vector<16x32xf32>
    %cst_11 = arith.constant 9.99999996E-13 : f32
    %22 = vector.broadcast %cst_11 : f32 to vector<16x1xf32>
    %23 = arith.addf %19, %22 : vector<16x1xf32>
    %24 = math.rsqrt %23 : vector<16x1xf32>
    %25 = vector.broadcast %24 : vector<16x1xf32> to vector<16x32xf32>
    %26 = arith.mulf %21, %25 : vector<16x32xf32>
    %c0_12 = arith.constant 0 : index
    %c0_13 = arith.constant 0 : index
    %27 = vector.load %arg5[%c0_12, %c0_13] : memref<1x32xf32, #tpu.memory_space<vmem>>, vector<1x32xf32>
    %28 = vector.broadcast %27 : vector<1x32xf32> to vector<16x32xf32>
    %29 = arith.mulf %26, %28 : vector<16x32xf32>
    %c0_14 = arith.constant 0 : index
    %c0_15 = arith.constant 0 : index
    %30 = vector.load %arg6[%c0_14, %c0_15] : memref<1x32xf32, #tpu.memory_space<vmem>>, vector<1x32xf32>
    %31 = vector.broadcast %30 : vector<1x32xf32> to vector<16x32xf32>
    %32 = arith.addf %29, %31 : vector<16x32xf32>
    %33 = arith.truncf %32 : vector<16x32xf32> to vector<16x32xbf16>
    %c0_16 = arith.constant 0 : index
    %c0_17 = arith.constant 0 : index
    %34 = vector.load %arg7[%c0_16, %c0_17] : memref<16x32xbf16, #tpu.memory_space<vmem>>, vector<16x32xbf16>
    tpu.vector_store %arg7[%c0_16, %c0_17], %33 {strides = array<i32>} : memref<16x32xbf16, #tpu.memory_space<vmem>>, vector<16x32xbf16>,
    return
  }
  func.func @transform_0(%arg0: i32) -> (i32, i32) {
    %c0_i32 = arith.constant 0 : i32
    %c0_i32_0 = arith.constant 0 : i32
    return %arg0, %c0_i32 : i32, i32
  }
  func.func @transform_1(%arg0: i32) -> (i32, i32) {
    %c0_i32 = arith.constant 0 : i32
    %c0_i32_0 = arith.constant 0 : i32
    return %arg0, %c0_i32 : i32, i32
  }
  func.func @transform_2(%arg0: i32) -> (i32, i32) {
    %c0_i32 = arith.constant 0 : i32
    %c0_i32_0 = arith.constant 0 : i32
    %c0_i32_1 = arith.constant 0 : i32
    return %c0_i32, %c0_i32_0 : i32, i32
  }
  func.func @transform_3(%arg0: i32) -> (i32, i32) {
    %c0_i32 = arith.constant 0 : i32
    %c0_i32_0 = arith.constant 0 : i32
    %c0_i32_1 = arith.constant 0 : i32
    return %c0_i32, %c0_i32_0 : i32, i32
  }
  func.func @transform_4(%arg0: i32) -> (i32, i32) {
    %c0_i32 = arith.constant 0 : i32
    %c0_i32_0 = arith.constant 0 : i32
    %c0_i32_1 = arith.constant 0 : i32
    return %c0_i32, %c0_i32_0 : i32, i32
  }
  func.func @transform_5(%arg0: i32) -> (i32, i32) {
    %c0_i32 = arith.constant 0 : i32
    %c0_i32_0 = arith.constant 0 : i32
    %c0_i32_1 = arith.constant 0 : i32
    return %c0_i32, %c0_i32_0 : i32, i32
  }
  func.func @transform_6(%arg0: i32) -> (i32, i32) {
    %c0_i32 = arith.constant 0 : i32
    %c0_i32_0 = arith.constant 0 : i32
    return %arg0, %c0_i32 : i32, i32
  }
}

module attributes {stable_mosaic.version = 11 : i64} {
  func.func @_linear_kernel(%arg0: i32, %arg1: memref<16x32xbf16, #tpu.memory_space<vmem>>, %arg2: memref<32x64xbf16, #tpu.memory_space<vmem>>, %arg3: memref<1x64xf32, #tpu.memory_space<vmem>>, %arg4: memref<16x64xbf16, #tpu.memory_space<vmem>>) attributes {dimension_semantics = [#tpu.dimension_semantics<parallel>], iteration_bounds = array<i64: 1>, scalar_prefetch = 0 : i64, scratch_operands = 0 : i64, tpu.core_type = #tpu.core_type<tc>, window_params = [{transform_indices = @transform_0, window_bounds = array<i64: 16, 32>}, {pipeline_mode = #tpu.pipeline_mode<synchronous>, transform_indices = @transform_1, window_bounds = array<i64: 32, 64>}, {pipeline_mode = #tpu.pipeline_mode<synchronous>, transform_indices = @transform_2, window_bounds = array<i64: 1, 64>}, {transform_indices = @transform_3, window_bounds = array<i64: 16, 64>}]} {
    %c0 = arith.constant 0 : index
    %c0_0 = arith.constant 0 : index
    %0 = vector.load %arg1[%c0, %c0_0] : memref<16x32xbf16, #tpu.memory_space<vmem>>, vector<16x32xbf16>
    %c0_1 = arith.constant 0 : index
    %c0_2 = arith.constant 0 : index
    %1 = vector.load %arg2[%c0_1, %c0_2] : memref<32x64xbf16, #tpu.memory_space<vmem>>, vector<32x64xbf16>
    %cst = arith.constant dense<0.000000e+00> : vector<16x64xf32>
    %2 = tpu.matmul %0, %1, %cst {dimension_numbers = #tpu.dot_dimension_numbers<[1], [0], [0], [1], [0, 0, 1, 1], [], []>} : vector<16x32xbf16>, vector<32x64xbf16>, vector<16x64xf32> -> vector<16x64xf32>
    %c0_3 = arith.constant 0 : index
    %c0_4 = arith.constant 0 : index
    %3 = vector.load %arg3[%c0_3, %c0_4] : memref<1x64xf32, #tpu.memory_space<vmem>>, vector<1x64xf32>
    %4 = vector.broadcast %3 : vector<1x64xf32> to vector<16x64xf32>
    %5 = arith.addf %2, %4 : vector<16x64xf32>
    %6 = arith.mulf %5, %5 : vector<16x64xf32>
    %7 = arith.mulf %5, %6 : vector<16x64xf32>
    %cst_5 = arith.constant 4.471500e-02 : f32
    %8 = vector.broadcast %cst_5 : f32 to vector<16x64xf32>
    %9 = arith.mulf %8, %7 : vector<16x64xf32>
    %10 = arith.addf %5, %9 : vector<16x64xf32>
    %cst_6 = arith.constant 0.797884583 : f32
    %11 = vector.broadcast %cst_6 : f32 to vector<16x64xf32>
    %12 = arith.mulf %11, %10 : vector<16x64xf32>
    %13 = math.tanh %12 : vector<16x64xf32>
    %cst_7 = arith.constant 1.000000e+00 : f32
    %14 = vector.broadcast %cst_7 : f32 to vector<16x64xf32>
    %15 = arith.addf %14, %13 : vector<16x64xf32>
    %cst_8 = arith.constant 5.000000e-01 : f32
    %16 = vector.broadcast %cst_8 : f32 to vector<16x64xf32>
    %17 = arith.mulf %16, %15 : vector<16x64xf32>
    %18 = arith.mulf %5, %17 : vector<16x64xf32>
    %19 = arith.truncf %18 : vector<16x64xf32> to vector<16x64xbf16>
    %c0_9 = arith.constant 0 : index
    %c0_10 = arith.constant 0 : index
    %20 = vector.load %arg4[%c0_9, %c0_10] : memref<16x64xbf16, #tpu.memory_space<vmem>>, vector<16x64xbf16>
    tpu.vector_store %arg4[%c0_9, %c0_10], %19 {strides = array<i32>} : memref<16x64xbf16, #tpu.memory_space<vmem>>, vector<16x64xbf16>,
    return
  }
  func.func @transform_0(%arg0: i32) -> (i32, i32) {
    %c0_i32 = arith.constant 0 : i32
    %c0_i32_0 = arith.constant 0 : i32
    return %arg0, %c0_i32 : i32, i32
  }
  func.func @transform_1(%arg0: i32) -> (i32, i32) {
    %c0_i32 = arith.constant 0 : i32
    %c0_i32_0 = arith.constant 0 : i32
    %c0_i32_1 = arith.constant 0 : i32
    return %c0_i32, %c0_i32_0 : i32, i32
  }
  func.func @transform_2(%arg0: i32) -> (i32, i32) {
    %c0_i32 = arith.constant 0 : i32
    %c0_i32_0 = arith.constant 0 : i32
    %c0_i32_1 = arith.constant 0 : i32
    return %c0_i32, %c0_i32_0 : i32, i32
  }
  func.func @transform_3(%arg0: i32) -> (i32, i32) {
    %c0_i32 = arith.constant 0 : i32
    %c0_i32_0 = arith.constant 0 : i32
    return %arg0, %c0_i32 : i32, i32
  }
}

module attributes {stable_mosaic.version = 11 : i64} {
  func.func @_linear_res_ln_kernel(%arg0: i32, %arg1: memref<16x64xbf16, #tpu.memory_space<vmem>>, %arg2: memref<16x32xbf16, #tpu.memory_space<vmem>>, %arg3: memref<64x32xbf16, #tpu.memory_space<vmem>>, %arg4: memref<1x32xf32, #tpu.memory_space<vmem>>, %arg5: memref<1x32xf32, #tpu.memory_space<vmem>>, %arg6: memref<1x32xf32, #tpu.memory_space<vmem>>, %arg7: memref<16x32xbf16, #tpu.memory_space<vmem>>) attributes {dimension_semantics = [#tpu.dimension_semantics<parallel>], iteration_bounds = array<i64: 1>, scalar_prefetch = 0 : i64, scratch_operands = 0 : i64, tpu.core_type = #tpu.core_type<tc>, window_params = [{transform_indices = @transform_0, window_bounds = array<i64: 16, 64>}, {transform_indices = @transform_1, window_bounds = array<i64: 16, 32>}, {pipeline_mode = #tpu.pipeline_mode<synchronous>, transform_indices = @transform_2, window_bounds = array<i64: 64, 32>}, {pipeline_mode = #tpu.pipeline_mode<synchronous>, transform_indices = @transform_3, window_bounds = array<i64: 1, 32>}, {pipeline_mode = #tpu.pipeline_mode<synchronous>, transform_indices = @transform_4, window_bounds = array<i64: 1, 32>}, {pipeline_mode = #tpu.pipeline_mode<synchronous>, transform_indices = @transform_5, window_bounds = array<i64: 1, 32>}, {transform_indices = @transform_6, window_bounds = array<i64: 16, 32>}]} {
    %c0 = arith.constant 0 : index
    %c0_0 = arith.constant 0 : index
    %0 = vector.load %arg1[%c0, %c0_0] : memref<16x64xbf16, #tpu.memory_space<vmem>>, vector<16x64xbf16>
    %c0_1 = arith.constant 0 : index
    %c0_2 = arith.constant 0 : index
    %1 = vector.load %arg3[%c0_1, %c0_2] : memref<64x32xbf16, #tpu.memory_space<vmem>>, vector<64x32xbf16>
    %cst = arith.constant dense<0.000000e+00> : vector<16x32xf32>
    %2 = tpu.matmul %0, %1, %cst {dimension_numbers = #tpu.dot_dimension_numbers<[1], [0], [0], [1], [0, 0, 1, 1], [], []>} : vector<16x64xbf16>, vector<64x32xbf16>, vector<16x32xf32> -> vector<16x32xf32>
    %c0_3 = arith.constant 0 : index
    %c0_4 = arith.constant 0 : index
    %3 = vector.load %arg4[%c0_3, %c0_4] : memref<1x32xf32, #tpu.memory_space<vmem>>, vector<1x32xf32>
    %4 = vector.broadcast %3 : vector<1x32xf32> to vector<16x32xf32>
    %5 = arith.addf %2, %4 : vector<16x32xf32>
    %c0_5 = arith.constant 0 : index
    %c0_6 = arith.constant 0 : index
    %6 = vector.load %arg2[%c0_5, %c0_6] : memref<16x32xbf16, #tpu.memory_space<vmem>>, vector<16x32xbf16>
    %7 = arith.extf %6 : vector<16x32xbf16> to vector<16x32xf32>
    %8 = arith.addf %5, %7 : vector<16x32xf32>
    %cst_7 = arith.constant dense<0.000000e+00> : vector<16xf32>
    %9 = vector.multi_reduction <add>, %8, %cst_7 [1] : vector<16x32xf32> to vector<16xf32>
    %10 = vector.shape_cast %9 : vector<16xf32> to vector<16x1xf32>
    %cst_8 = arith.constant 3.200000e+01 : f32
    %11 = vector.broadcast %cst_8 : f32 to vector<16x1xf32>
    %12 = arith.divf %10, %11 : vector<16x1xf32>
    %13 = vector.broadcast %12 : vector<16x1xf32> to vector<16x32xf32>
    %14 = arith.subf %8, %13 : vector<16x32xf32>
    %15 = arith.mulf %14, %14 : vector<16x32xf32>
    %cst_9 = arith.constant dense<0.000000e+00> : vector<16xf32>
    %16 = vector.multi_reduction <add>, %15, %cst_9 [1] : vector<16x32xf32> to vector<16xf32>
    %17 = vector.shape_cast %16 : vector<16xf32> to vector<16x1xf32>
    %cst_10 = arith.constant 3.200000e+01 : f32
    %18 = vector.broadcast %cst_10 : f32 to vector<16x1xf32>
    %19 = arith.divf %17, %18 : vector<16x1xf32>
    %20 = vector.broadcast %12 : vector<16x1xf32> to vector<16x32xf32>
    %21 = arith.subf %8, %20 : vector<16x32xf32>
    %cst_11 = arith.constant 9.99999996E-13 : f32
    %22 = vector.broadcast %cst_11 : f32 to vector<16x1xf32>
    %23 = arith.addf %19, %22 : vector<16x1xf32>
    %24 = math.rsqrt %23 : vector<16x1xf32>
    %25 = vector.broadcast %24 : vector<16x1xf32> to vector<16x32xf32>
    %26 = arith.mulf %21, %25 : vector<16x32xf32>
    %c0_12 = arith.constant 0 : index
    %c0_13 = arith.constant 0 : index
    %27 = vector.load %arg5[%c0_12, %c0_13] : memref<1x32xf32, #tpu.memory_space<vmem>>, vector<1x32xf32>
    %28 = vector.broadcast %27 : vector<1x32xf32> to vector<16x32xf32>
    %29 = arith.mulf %26, %28 : vector<16x32xf32>
    %c0_14 = arith.constant 0 : index
    %c0_15 = arith.constant 0 : index
    %30 = vector.load %arg6[%c0_14, %c0_15] : memref<1x32xf32, #tpu.memory_space<vmem>>, vector<1x32xf32>
    %31 = vector.broadcast %30 : vector<1x32xf32> to vector<16x32xf32>
    %32 = arith.addf %29, %31 : vector<16x32xf32>
    %33 = arith.truncf %32 : vector<16x32xf32> to vector<16x32xbf16>
    %c0_16 = arith.constant 0 : index
    %c0_17 = arith.constant 0 : index
    %34 = vector.load %arg7[%c0_16, %c0_17] : memref<16x32xbf16, #tpu.memory_space<vmem>>, vector<16x32xbf16>
    tpu.vector_store %arg7[%c0_16, %c0_17], %33 {strides = array<i32>} : memref<16x32xbf16, #tpu.memory_space<vmem>>, vector<16x32xbf16>,
    return
  }
  func.func @transform_0(%arg0: i32) -> (i32, i32) {
    %c0_i32 = arith.constant 0 : i32
    %c0_i32_0 = arith.constant 0 : i32
    return %arg0, %c0_i32 : i32, i32
  }
  func.func @transform_1(%arg0: i32) -> (i32, i32) {
    %c0_i32 = arith.constant 0 : i32
    %c0_i32_0 = arith.constant 0 : i32
    return %arg0, %c0_i32 : i32, i32
  }
  func.func @transform_2(%arg0: i32) -> (i32, i32) {
    %c0_i32 = arith.constant 0 : i32
    %c0_i32_0 = arith.constant 0 : i32
    %c0_i32_1 = arith.constant 0 : i32
    return %c0_i32, %c0_i32_0 : i32, i32
  }
  func.func @transform_3(%arg0: i32) -> (i32, i32) {
    %c0_i32 = arith.constant 0 : i32
    %c0_i32_0 = arith.constant 0 : i32
    %c0_i32_1 = arith.constant 0 : i32
    return %c0_i32, %c0_i32_0 : i32, i32
  }
  func.func @transform_4(%arg0: i32) -> (i32, i32) {
    %c0_i32 = arith.constant 0 : i32
    %c0_i32_0 = arith.constant 0 : i32
    %c0_i32_1 = arith.constant 0 : i32
    return %c0_i32, %c0_i32_0 : i32, i32
  }
  func.func @transform_5(%arg0: i32) -> (i32, i32) {
    %c0_i32 = arith.constant 0 : i32
    %c0_i32_0 = arith.constant 0 : i32
    %c0_i32_1 = arith.constant 0 : i32
    return %c0_i32, %c0_i32_0 : i32, i32
  }
  func.func @transform_6(%arg0: i32) -> (i32, i32) {
    %c0_i32 = arith.constant 0 : i32
    %c0_i32_0 = arith.constant 0 : i32
    return %arg0, %c0_i32 : i32, i32
  }
}

module attributes {stable_mosaic.version = 11 : i64} {
  func.func @_lstm_scan_kernel(%arg0: i32, %arg1: memref<1x2x64xf32, #tpu.memory_space<vmem>>, %arg2: memref<16x64xbf16, #tpu.memory_space<vmem>>, %arg3: memref<1x2x16xf32, #tpu.memory_space<vmem>>, %arg4: memref<2x16xf32, #tpu.memory_space<vmem>>, %arg5: memref<2x16xf32, #tpu.memory_space<vmem>>) attributes {dimension_semantics = [#tpu.dimension_semantics<arbitrary>], iteration_bounds = array<i64: 8>, scalar_prefetch = 0 : i64, scratch_operands = 2 : i64, tpu.core_type = #tpu.core_type<tc>, window_params = [{transform_indices = @transform_0, window_bounds = array<i64: 1, 2, 64>}, {pipeline_mode = #tpu.pipeline_mode<synchronous>, transform_indices = @transform_1, window_bounds = array<i64: 16, 64>}, {transform_indices = @transform_2, window_bounds = array<i64: 1, 2, 16>}]} {
    %c0_i32 = arith.constant 0 : i32
    %0 = arith.cmpi eq, %arg0, %c0_i32 : i32
    %1 = arith.extui %0 : i1 to i32
    %c0_i32_0 = arith.constant 0 : i32
    %2 = arith.cmpi ne, %1, %c0_i32_0 : i32
    scf.if %2 {
      %cst_19 = arith.constant 0.000000e+00 : f32
      %41 = vector.broadcast %cst_19 : f32 to vector<2x16xf32>
      %c0_20 = arith.constant 0 : index
      %c0_21 = arith.constant 0 : index
      %42 = vector.load %arg4[%c0_20, %c0_21] : memref<2x16xf32, #tpu.memory_space<vmem>>, vector<2x16xf32>
      tpu.vector_store %arg4[%c0_20, %c0_21], %41 {strides = array<i32>} : memref<2x16xf32, #tpu.memory_space<vmem>>, vector<2x16xf32>,
      %cst_22 = arith.constant 0.000000e+00 : f32
      %43 = vector.broadcast %cst_22 : f32 to vector<2x16xf32>
      %c0_23 = arith.constant 0 : index
      %c0_24 = arith.constant 0 : index
      %44 = vector.load %arg5[%c0_23, %c0_24] : memref<2x16xf32, #tpu.memory_space<vmem>>, vector<2x16xf32>
      tpu.vector_store %arg5[%c0_23, %c0_24], %43 {strides = array<i32>} : memref<2x16xf32, #tpu.memory_space<vmem>>, vector<2x16xf32>,
    } else {
    }
    %c0 = arith.constant 0 : index
    %c0_1 = arith.constant 0 : index
    %3 = vector.load %arg4[%c0, %c0_1] : memref<2x16xf32, #tpu.memory_space<vmem>>, vector<2x16xf32>
    %c0_2 = arith.constant 0 : index
    %c0_3 = arith.constant 0 : index
    %c0_4 = arith.constant 0 : index
    %4 = vector.load %arg1[%c0_2, %c0_3, %c0_4] : memref<1x2x64xf32, #tpu.memory_space<vmem>>, vector<1x2x64xf32>
    %5 = vector.shape_cast %4 : vector<1x2x64xf32> to vector<2x64xf32>
    %6 = arith.truncf %3 : vector<2x16xf32> to vector<2x16xbf16>
    %c0_5 = arith.constant 0 : index
    %c0_6 = arith.constant 0 : index
    %7 = vector.load %arg2[%c0_5, %c0_6] : memref<16x64xbf16, #tpu.memory_space<vmem>>, vector<16x64xbf16>
    %cst = arith.constant dense<0.000000e+00> : vector<2x64xf32>
    %8 = tpu.matmul %6, %7, %cst {dimension_numbers = #tpu.dot_dimension_numbers<[1], [0], [0], [1], [0, 0, 1, 1], [], []>} : vector<2x16xbf16>, vector<16x64xbf16>, vector<2x64xf32> -> vector<2x64xf32>
    %9 = arith.addf %5, %8 : vector<2x64xf32>
    %10 = vector.extract_strided_slice %9 {offsets = [0, 0], sizes = [2, 16], strides = [1, 1]} : vector<2x64xf32> to vector<2x16xf32>
    %11 = arith.negf %10 : vector<2x16xf32>
    %12 = math.exp %11 : vector<2x16xf32>
    %cst_7 = arith.constant 1.000000e+00 : f32
    %13 = vector.broadcast %cst_7 : f32 to vector<2x16xf32>
    %14 = arith.addf %13, %12 : vector<2x16xf32>
    %15 = arith.divf %13, %14 : vector<2x16xf32>
    %16 = vector.extract_strided_slice %9 {offsets = [0, 16], sizes = [2, 16], strides = [1, 1]} : vector<2x64xf32> to vector<2x16xf32>
    %17 = arith.negf %16 : vector<2x16xf32>
    %18 = math.exp %17 : vector<2x16xf32>
    %cst_8 = arith.constant 1.000000e+00 : f32
    %19 = vector.broadcast %cst_8 : f32 to vector<2x16xf32>
    %20 = arith.addf %19, %18 : vector<2x16xf32>
    %21 = arith.divf %19, %20 : vector<2x16xf32>
    %22 = vector.extract_strided_slice %9 {offsets = [0, 32], sizes = [2, 16], strides = [1, 1]} : vector<2x64xf32> to vector<2x16xf32>
    %23 = math.tanh %22 : vector<2x16xf32>
    %24 = vector.extract_strided_slice %9 {offsets = [0, 48], sizes = [2, 16], strides = [1, 1]} : vector<2x64xf32> to vector<2x16xf32>
    %25 = arith.negf %24 : vector<2x16xf32>
    %26 = math.exp %25 : vector<2x16xf32>
    %cst_9 = arith.constant 1.000000e+00 : f32
    %27 = vector.broadcast %cst_9 : f32 to vector<2x16xf32>
    %28 = arith.addf %27, %26 : vector<2x16xf32>
    %29 = arith.divf %27, %28 : vector<2x16xf32>
    %c0_10 = arith.constant 0 : index
    %c0_11 = arith.constant 0 : index
    %30 = vector.load %arg5[%c0_10, %c0_11] : memref<2x16xf32, #tpu.memory_space<vmem>>, vector<2x16xf32>
    %31 = arith.mulf %21, %30 : vector<2x16xf32>
    %32 = arith.mulf %15, %23 : vector<2x16xf32>
    %33 = arith.addf %31, %32 : vector<2x16xf32>
    %34 = math.tanh %33 : vector<2x16xf32>
    %35 = arith.mulf %29, %34 : vector<2x16xf32>
    %c0_12 = arith.constant 0 : index
    %c0_13 = arith.constant 0 : index
    %36 = vector.load %arg5[%c0_12, %c0_13] : memref<2x16xf32, #tpu.memory_space<vmem>>, vector<2x16xf32>
    tpu.vector_store %arg5[%c0_12, %c0_13], %33 {strides = array<i32>} : memref<2x16xf32, #tpu.memory_space<vmem>>, vector<2x16xf32>,
    %c0_14 = arith.constant 0 : index
    %c0_15 = arith.constant 0 : index
    %37 = vector.load %arg4[%c0_14, %c0_15] : memref<2x16xf32, #tpu.memory_space<vmem>>, vector<2x16xf32>
    tpu.vector_store %arg4[%c0_14, %c0_15], %35 {strides = array<i32>} : memref<2x16xf32, #tpu.memory_space<vmem>>, vector<2x16xf32>,
    %c0_16 = arith.constant 0 : index
    %c0_17 = arith.constant 0 : index
    %c0_18 = arith.constant 0 : index
    %38 = vector.load %arg3[%c0_16, %c0_17, %c0_18] : memref<1x2x16xf32, #tpu.memory_space<vmem>>, vector<1x2x16xf32>
    %39 = vector.shape_cast %38 : vector<1x2x16xf32> to vector<2x16xf32>
    %40 = vector.shape_cast %35 : vector<2x16xf32> to vector<1x2x16xf32>
    tpu.vector_store %arg3[%c0_16, %c0_17, %c0_18], %40 {strides = array<i32>} : memref<1x2x16xf32, #tpu.memory_space<vmem>>, vector<1x2x16xf32>,
    return
  }
  func.func @transform_0(%arg0: i32) -> (i32, i32, i32) {
    %c0_i32 = arith.constant 0 : i32
    %c0_i32_0 = arith.constant 0 : i32
    %c0_i32_1 = arith.constant 0 : i32
    return %arg0, %c0_i32, %c0_i32_0 : i32, i32, i32
  }
  func.func @transform_1(%arg0: i32) -> (i32, i32) {
    %c0_i32 = arith.constant 0 : i32
    %c0_i32_0 = arith.constant 0 : i32
    %c0_i32_1 = arith.constant 0 : i32
    return %c0_i32, %c0_i32_0 : i32, i32
  }
  func.func @transform_2(%arg0: i32) -> (i32, i32, i32) {
    %c0_i32 = arith.constant 0 : i32
    %c0_i32_0 = arith.constant 0 : i32
    %c0_i32_1 = arith.constant 0 : i32
    return %arg0, %c0_i32, %c0_i32_0 : i32, i32, i32
  }
}

module attributes {stable_mosaic.version = 11 : i64} {
  func.func @_linear_kernel(%arg0: i32, %arg1: memref<16x32xbf16, #tpu.memory_space<vmem>>, %arg2: memref<32x64xbf16, #tpu.memory_space<vmem>>, %arg3: memref<1x64xf32, #tpu.memory_space<vmem>>, %arg4: memref<16x64xf32, #tpu.memory_space<vmem>>) attributes {dimension_semantics = [#tpu.dimension_semantics<parallel>], iteration_bounds = array<i64: 1>, scalar_prefetch = 0 : i64, scratch_operands = 0 : i64, tpu.core_type = #tpu.core_type<tc>, window_params = [{transform_indices = @transform_0, window_bounds = array<i64: 16, 32>}, {pipeline_mode = #tpu.pipeline_mode<synchronous>, transform_indices = @transform_1, window_bounds = array<i64: 32, 64>}, {pipeline_mode = #tpu.pipeline_mode<synchronous>, transform_indices = @transform_2, window_bounds = array<i64: 1, 64>}, {transform_indices = @transform_3, window_bounds = array<i64: 16, 64>}]} {
    %c0 = arith.constant 0 : index
    %c0_0 = arith.constant 0 : index
    %0 = vector.load %arg1[%c0, %c0_0] : memref<16x32xbf16, #tpu.memory_space<vmem>>, vector<16x32xbf16>
    %c0_1 = arith.constant 0 : index
    %c0_2 = arith.constant 0 : index
    %1 = vector.load %arg2[%c0_1, %c0_2] : memref<32x64xbf16, #tpu.memory_space<vmem>>, vector<32x64xbf16>
    %cst = arith.constant dense<0.000000e+00> : vector<16x64xf32>
    %2 = tpu.matmul %0, %1, %cst {dimension_numbers = #tpu.dot_dimension_numbers<[1], [0], [0], [1], [0, 0, 1, 1], [], []>} : vector<16x32xbf16>, vector<32x64xbf16>, vector<16x64xf32> -> vector<16x64xf32>
    %c0_3 = arith.constant 0 : index
    %c0_4 = arith.constant 0 : index
    %3 = vector.load %arg3[%c0_3, %c0_4] : memref<1x64xf32, #tpu.memory_space<vmem>>, vector<1x64xf32>
    %4 = vector.broadcast %3 : vector<1x64xf32> to vector<16x64xf32>
    %5 = arith.addf %2, %4 : vector<16x64xf32>
    %c0_5 = arith.constant 0 : index
    %c0_6 = arith.constant 0 : index
    %6 = vector.load %arg4[%c0_5, %c0_6] : memref<16x64xf32, #tpu.memory_space<vmem>>, vector<16x64xf32>
    tpu.vector_store %arg4[%c0_5, %c0_6], %5 {strides = array<i32>} : memref<16x64xf32, #tpu.memory_space<vmem>>, vector<16x64xf32>,
    return
  }
  func.func @transform_0(%arg0: i32) -> (i32, i32) {
    %c0_i32 = arith.constant 0 : i32
    %c0_i32_0 = arith.constant 0 : i32
    return %arg0, %c0_i32 : i32, i32
  }
  func.func @transform_1(%arg0: i32) -> (i32, i32) {
    %c0_i32 = arith.constant 0 : i32
    %c0_i32_0 = arith.constant 0 : i32
    %c0_i32_1 = arith.constant 0 : i32
    return %c0_i32, %c0_i32_0 : i32, i32
  }
  func.func @transform_2(%arg0: i32) -> (i32, i32) {
    %c0_i32 = arith.constant 0 : i32
    %c0_i32_0 = arith.constant 0 : i32
    %c0_i32_1 = arith.constant 0 : i32
    return %c0_i32, %c0_i32_0 : i32, i32
  }
  func.func @transform_3(%arg0: i32) -> (i32, i32) {
    %c0_i32 = arith.constant 0 : i32
    %c0_i32_0 = arith.constant 0 : i32
    return %arg0, %c0_i32 : i32, i32
  }
}

module attributes {stable_mosaic.version = 11 : i64} {
  func.func @_lstm_scan_kernel(%arg0: i32, %arg1: memref<1x2x64xf32, #tpu.memory_space<vmem>>, %arg2: memref<16x64xbf16, #tpu.memory_space<vmem>>, %arg3: memref<1x2x16xf32, #tpu.memory_space<vmem>>, %arg4: memref<2x16xf32, #tpu.memory_space<vmem>>, %arg5: memref<2x16xf32, #tpu.memory_space<vmem>>) attributes {dimension_semantics = [#tpu.dimension_semantics<arbitrary>], iteration_bounds = array<i64: 8>, scalar_prefetch = 0 : i64, scratch_operands = 2 : i64, tpu.core_type = #tpu.core_type<tc>, window_params = [{transform_indices = @transform_0, window_bounds = array<i64: 1, 2, 64>}, {pipeline_mode = #tpu.pipeline_mode<synchronous>, transform_indices = @transform_1, window_bounds = array<i64: 16, 64>}, {transform_indices = @transform_2, window_bounds = array<i64: 1, 2, 16>}]} {
    %c0_i32 = arith.constant 0 : i32
    %0 = arith.cmpi eq, %arg0, %c0_i32 : i32
    %1 = arith.extui %0 : i1 to i32
    %c0_i32_0 = arith.constant 0 : i32
    %2 = arith.cmpi ne, %1, %c0_i32_0 : i32
    scf.if %2 {
      %cst_19 = arith.constant 0.000000e+00 : f32
      %41 = vector.broadcast %cst_19 : f32 to vector<2x16xf32>
      %c0_20 = arith.constant 0 : index
      %c0_21 = arith.constant 0 : index
      %42 = vector.load %arg4[%c0_20, %c0_21] : memref<2x16xf32, #tpu.memory_space<vmem>>, vector<2x16xf32>
      tpu.vector_store %arg4[%c0_20, %c0_21], %41 {strides = array<i32>} : memref<2x16xf32, #tpu.memory_space<vmem>>, vector<2x16xf32>,
      %cst_22 = arith.constant 0.000000e+00 : f32
      %43 = vector.broadcast %cst_22 : f32 to vector<2x16xf32>
      %c0_23 = arith.constant 0 : index
      %c0_24 = arith.constant 0 : index
      %44 = vector.load %arg5[%c0_23, %c0_24] : memref<2x16xf32, #tpu.memory_space<vmem>>, vector<2x16xf32>
      tpu.vector_store %arg5[%c0_23, %c0_24], %43 {strides = array<i32>} : memref<2x16xf32, #tpu.memory_space<vmem>>, vector<2x16xf32>,
    } else {
    }
    %c0 = arith.constant 0 : index
    %c0_1 = arith.constant 0 : index
    %3 = vector.load %arg4[%c0, %c0_1] : memref<2x16xf32, #tpu.memory_space<vmem>>, vector<2x16xf32>
    %c0_2 = arith.constant 0 : index
    %c0_3 = arith.constant 0 : index
    %c0_4 = arith.constant 0 : index
    %4 = vector.load %arg1[%c0_2, %c0_3, %c0_4] : memref<1x2x64xf32, #tpu.memory_space<vmem>>, vector<1x2x64xf32>
    %5 = vector.shape_cast %4 : vector<1x2x64xf32> to vector<2x64xf32>
    %6 = arith.truncf %3 : vector<2x16xf32> to vector<2x16xbf16>
    %c0_5 = arith.constant 0 : index
    %c0_6 = arith.constant 0 : index
    %7 = vector.load %arg2[%c0_5, %c0_6] : memref<16x64xbf16, #tpu.memory_space<vmem>>, vector<16x64xbf16>
    %cst = arith.constant dense<0.000000e+00> : vector<2x64xf32>
    %8 = tpu.matmul %6, %7, %cst {dimension_numbers = #tpu.dot_dimension_numbers<[1], [0], [0], [1], [0, 0, 1, 1], [], []>} : vector<2x16xbf16>, vector<16x64xbf16>, vector<2x64xf32> -> vector<2x64xf32>
    %9 = arith.addf %5, %8 : vector<2x64xf32>
    %10 = vector.extract_strided_slice %9 {offsets = [0, 0], sizes = [2, 16], strides = [1, 1]} : vector<2x64xf32> to vector<2x16xf32>
    %11 = arith.negf %10 : vector<2x16xf32>
    %12 = math.exp %11 : vector<2x16xf32>
    %cst_7 = arith.constant 1.000000e+00 : f32
    %13 = vector.broadcast %cst_7 : f32 to vector<2x16xf32>
    %14 = arith.addf %13, %12 : vector<2x16xf32>
    %15 = arith.divf %13, %14 : vector<2x16xf32>
    %16 = vector.extract_strided_slice %9 {offsets = [0, 16], sizes = [2, 16], strides = [1, 1]} : vector<2x64xf32> to vector<2x16xf32>
    %17 = arith.negf %16 : vector<2x16xf32>
    %18 = math.exp %17 : vector<2x16xf32>
    %cst_8 = arith.constant 1.000000e+00 : f32
    %19 = vector.broadcast %cst_8 : f32 to vector<2x16xf32>
    %20 = arith.addf %19, %18 : vector<2x16xf32>
    %21 = arith.divf %19, %20 : vector<2x16xf32>
    %22 = vector.extract_strided_slice %9 {offsets = [0, 32], sizes = [2, 16], strides = [1, 1]} : vector<2x64xf32> to vector<2x16xf32>
    %23 = math.tanh %22 : vector<2x16xf32>
    %24 = vector.extract_strided_slice %9 {offsets = [0, 48], sizes = [2, 16], strides = [1, 1]} : vector<2x64xf32> to vector<2x16xf32>
    %25 = arith.negf %24 : vector<2x16xf32>
    %26 = math.exp %25 : vector<2x16xf32>
    %cst_9 = arith.constant 1.000000e+00 : f32
    %27 = vector.broadcast %cst_9 : f32 to vector<2x16xf32>
    %28 = arith.addf %27, %26 : vector<2x16xf32>
    %29 = arith.divf %27, %28 : vector<2x16xf32>
    %c0_10 = arith.constant 0 : index
    %c0_11 = arith.constant 0 : index
    %30 = vector.load %arg5[%c0_10, %c0_11] : memref<2x16xf32, #tpu.memory_space<vmem>>, vector<2x16xf32>
    %31 = arith.mulf %21, %30 : vector<2x16xf32>
    %32 = arith.mulf %15, %23 : vector<2x16xf32>
    %33 = arith.addf %31, %32 : vector<2x16xf32>
    %34 = math.tanh %33 : vector<2x16xf32>
    %35 = arith.mulf %29, %34 : vector<2x16xf32>
    %c0_12 = arith.constant 0 : index
    %c0_13 = arith.constant 0 : index
    %36 = vector.load %arg5[%c0_12, %c0_13] : memref<2x16xf32, #tpu.memory_space<vmem>>, vector<2x16xf32>
    tpu.vector_store %arg5[%c0_12, %c0_13], %33 {strides = array<i32>} : memref<2x16xf32, #tpu.memory_space<vmem>>, vector<2x16xf32>,
    %c0_14 = arith.constant 0 : index
    %c0_15 = arith.constant 0 : index
    %37 = vector.load %arg4[%c0_14, %c0_15] : memref<2x16xf32, #tpu.memory_space<vmem>>, vector<2x16xf32>
    tpu.vector_store %arg4[%c0_14, %c0_15], %35 {strides = array<i32>} : memref<2x16xf32, #tpu.memory_space<vmem>>, vector<2x16xf32>,
    %c0_16 = arith.constant 0 : index
    %c0_17 = arith.constant 0 : index
    %c0_18 = arith.constant 0 : index
    %38 = vector.load %arg3[%c0_16, %c0_17, %c0_18] : memref<1x2x16xf32, #tpu.memory_space<vmem>>, vector<1x2x16xf32>
    %39 = vector.shape_cast %38 : vector<1x2x16xf32> to vector<2x16xf32>
    %40 = vector.shape_cast %35 : vector<2x16xf32> to vector<1x2x16xf32>
    tpu.vector_store %arg3[%c0_16, %c0_17, %c0_18], %40 {strides = array<i32>} : memref<1x2x16xf32, #tpu.memory_space<vmem>>, vector<1x2x16xf32>,
    return
  }
  func.func @transform_0(%arg0: i32) -> (i32, i32, i32) {
    %c7_i32 = arith.constant 7 : i32
    %0 = arith.subi %c7_i32, %arg0 : i32
    %c0_i32 = arith.constant 0 : i32
    %c0_i32_0 = arith.constant 0 : i32
    %c0_i32_1 = arith.constant 0 : i32
    return %0, %c0_i32, %c0_i32_0 : i32, i32, i32
  }
  func.func @transform_1(%arg0: i32) -> (i32, i32) {
    %c0_i32 = arith.constant 0 : i32
    %c0_i32_0 = arith.constant 0 : i32
    %c0_i32_1 = arith.constant 0 : i32
    return %c0_i32, %c0_i32_0 : i32, i32
  }
  func.func @transform_2(%arg0: i32) -> (i32, i32, i32) {
    %c7_i32 = arith.constant 7 : i32
    %0 = arith.subi %c7_i32, %arg0 : i32
    %c0_i32 = arith.constant 0 : i32
    %c0_i32_0 = arith.constant 0 : i32
    %c0_i32_1 = arith.constant 0 : i32
    return %0, %c0_i32, %c0_i32_0 : i32, i32, i32
  }
}

module attributes {stable_mosaic.version = 11 : i64} {
  func.func @_layernorm_kernel(%arg0: i32, %arg1: memref<16x32xf32, #tpu.memory_space<vmem>>, %arg2: memref<1x32xf32, #tpu.memory_space<vmem>>, %arg3: memref<1x32xf32, #tpu.memory_space<vmem>>, %arg4: memref<16x32xbf16, #tpu.memory_space<vmem>>) attributes {dimension_semantics = [#tpu.dimension_semantics<parallel>], iteration_bounds = array<i64: 1>, scalar_prefetch = 0 : i64, scratch_operands = 0 : i64, tpu.core_type = #tpu.core_type<tc>, window_params = [{transform_indices = @transform_0, window_bounds = array<i64: 16, 32>}, {pipeline_mode = #tpu.pipeline_mode<synchronous>, transform_indices = @transform_1, window_bounds = array<i64: 1, 32>}, {pipeline_mode = #tpu.pipeline_mode<synchronous>, transform_indices = @transform_2, window_bounds = array<i64: 1, 32>}, {transform_indices = @transform_3, window_bounds = array<i64: 16, 32>}]} {
    %c0 = arith.constant 0 : index
    %c0_0 = arith.constant 0 : index
    %0 = vector.load %arg1[%c0, %c0_0] : memref<16x32xf32, #tpu.memory_space<vmem>>, vector<16x32xf32>
    %cst = arith.constant dense<0.000000e+00> : vector<16xf32>
    %1 = vector.multi_reduction <add>, %0, %cst [1] : vector<16x32xf32> to vector<16xf32>
    %2 = vector.shape_cast %1 : vector<16xf32> to vector<16x1xf32>
    %cst_1 = arith.constant 3.200000e+01 : f32
    %3 = vector.broadcast %cst_1 : f32 to vector<16x1xf32>
    %4 = arith.divf %2, %3 : vector<16x1xf32>
    %5 = vector.broadcast %4 : vector<16x1xf32> to vector<16x32xf32>
    %6 = arith.subf %0, %5 : vector<16x32xf32>
    %7 = arith.mulf %6, %6 : vector<16x32xf32>
    %cst_2 = arith.constant dense<0.000000e+00> : vector<16xf32>
    %8 = vector.multi_reduction <add>, %7, %cst_2 [1] : vector<16x32xf32> to vector<16xf32>
    %9 = vector.shape_cast %8 : vector<16xf32> to vector<16x1xf32>
    %cst_3 = arith.constant 3.200000e+01 : f32
    %10 = vector.broadcast %cst_3 : f32 to vector<16x1xf32>
    %11 = arith.divf %9, %10 : vector<16x1xf32>
    %12 = vector.broadcast %4 : vector<16x1xf32> to vector<16x32xf32>
    %13 = arith.subf %0, %12 : vector<16x32xf32>
    %cst_4 = arith.constant 9.99999974E-6 : f32
    %14 = vector.broadcast %cst_4 : f32 to vector<16x1xf32>
    %15 = arith.addf %11, %14 : vector<16x1xf32>
    %16 = math.rsqrt %15 : vector<16x1xf32>
    %17 = vector.broadcast %16 : vector<16x1xf32> to vector<16x32xf32>
    %18 = arith.mulf %13, %17 : vector<16x32xf32>
    %c0_5 = arith.constant 0 : index
    %c0_6 = arith.constant 0 : index
    %19 = vector.load %arg2[%c0_5, %c0_6] : memref<1x32xf32, #tpu.memory_space<vmem>>, vector<1x32xf32>
    %20 = vector.broadcast %19 : vector<1x32xf32> to vector<16x32xf32>
    %21 = arith.mulf %18, %20 : vector<16x32xf32>
    %c0_7 = arith.constant 0 : index
    %c0_8 = arith.constant 0 : index
    %22 = vector.load %arg3[%c0_7, %c0_8] : memref<1x32xf32, #tpu.memory_space<vmem>>, vector<1x32xf32>
    %23 = vector.broadcast %22 : vector<1x32xf32> to vector<16x32xf32>
    %24 = arith.addf %21, %23 : vector<16x32xf32>
    %25 = arith.truncf %24 : vector<16x32xf32> to vector<16x32xbf16>
    %c0_9 = arith.constant 0 : index
    %c0_10 = arith.constant 0 : index
    %26 = vector.load %arg4[%c0_9, %c0_10] : memref<16x32xbf16, #tpu.memory_space<vmem>>, vector<16x32xbf16>
    tpu.vector_store %arg4[%c0_9, %c0_10], %25 {strides = array<i32>} : memref<16x32xbf16, #tpu.memory_space<vmem>>, vector<16x32xbf16>,
    return
  }
  func.func @transform_0(%arg0: i32) -> (i32, i32) {
    %c0_i32 = arith.constant 0 : i32
    %c0_i32_0 = arith.constant 0 : i32
    return %arg0, %c0_i32 : i32, i32
  }
  func.func @transform_1(%arg0: i32) -> (i32, i32) {
    %c0_i32 = arith.constant 0 : i32
    %c0_i32_0 = arith.constant 0 : i32
    %c0_i32_1 = arith.constant 0 : i32
    return %c0_i32, %c0_i32_0 : i32, i32
  }
  func.func @transform_2(%arg0: i32) -> (i32, i32) {
    %c0_i32 = arith.constant 0 : i32
    %c0_i32_0 = arith.constant 0 : i32
    %c0_i32_1 = arith.constant 0 : i32
    return %c0_i32, %c0_i32_0 : i32, i32
  }
  func.func @transform_3(%arg0: i32) -> (i32, i32) {
    %c0_i32 = arith.constant 0 : i32
    %c0_i32_0 = arith.constant 0 : i32
    return %arg0, %c0_i32 : i32, i32
  }
}

module attributes {stable_mosaic.version = 11 : i64} {
  func.func @_linear_kernel(%arg0: i32, %arg1: memref<16x32xbf16, #tpu.memory_space<vmem>>, %arg2: memref<32x128xbf16, #tpu.memory_space<vmem>>, %arg3: memref<1x128xf32, #tpu.memory_space<vmem>>, %arg4: memref<16x128xf32, #tpu.memory_space<vmem>>) attributes {dimension_semantics = [#tpu.dimension_semantics<parallel>], iteration_bounds = array<i64: 1>, scalar_prefetch = 0 : i64, scratch_operands = 0 : i64, tpu.core_type = #tpu.core_type<tc>, window_params = [{transform_indices = @transform_0, window_bounds = array<i64: 16, 32>}, {pipeline_mode = #tpu.pipeline_mode<synchronous>, transform_indices = @transform_1, window_bounds = array<i64: 32, 128>}, {pipeline_mode = #tpu.pipeline_mode<synchronous>, transform_indices = @transform_2, window_bounds = array<i64: 1, 128>}, {transform_indices = @transform_3, window_bounds = array<i64: 16, 128>}]} {
    %c0 = arith.constant 0 : index
    %c0_0 = arith.constant 0 : index
    %0 = vector.load %arg1[%c0, %c0_0] : memref<16x32xbf16, #tpu.memory_space<vmem>>, vector<16x32xbf16>
    %c0_1 = arith.constant 0 : index
    %c0_2 = arith.constant 0 : index
    %1 = vector.load %arg2[%c0_1, %c0_2] : memref<32x128xbf16, #tpu.memory_space<vmem>>, vector<32x128xbf16>
    %cst = arith.constant dense<0.000000e+00> : vector<16x128xf32>
    %2 = tpu.matmul %0, %1, %cst {dimension_numbers = #tpu.dot_dimension_numbers<[1], [0], [0], [1], [0, 0, 1, 1], [], []>} : vector<16x32xbf16>, vector<32x128xbf16>, vector<16x128xf32> -> vector<16x128xf32>
    %c0_3 = arith.constant 0 : index
    %c0_4 = arith.constant 0 : index
    %3 = vector.load %arg3[%c0_3, %c0_4] : memref<1x128xf32, #tpu.memory_space<vmem>>, vector<1x128xf32>
    %4 = vector.broadcast %3 : vector<1x128xf32> to vector<16x128xf32>
    %5 = arith.addf %2, %4 : vector<16x128xf32>
    %c0_5 = arith.constant 0 : index
    %c0_6 = arith.constant 0 : index
    %6 = vector.load %arg4[%c0_5, %c0_6] : memref<16x128xf32, #tpu.memory_space<vmem>>, vector<16x128xf32>
    tpu.vector_store %arg4[%c0_5, %c0_6], %5 {strides = array<i32>} : memref<16x128xf32, #tpu.memory_space<vmem>>, vector<16x128xf32>,
    return
  }
  func.func @transform_0(%arg0: i32) -> (i32, i32) {
    %c0_i32 = arith.constant 0 : i32
    %c0_i32_0 = arith.constant 0 : i32
    return %arg0, %c0_i32 : i32, i32
  }
  func.func @transform_1(%arg0: i32) -> (i32, i32) {
    %c0_i32 = arith.constant 0 : i32
    %c0_i32_0 = arith.constant 0 : i32
    %c0_i32_1 = arith.constant 0 : i32
    return %c0_i32, %c0_i32_0 : i32, i32
  }
  func.func @transform_2(%arg0: i32) -> (i32, i32) {
    %c0_i32 = arith.constant 0 : i32
    %c0_i32_0 = arith.constant 0 : i32
    %c0_i32_1 = arith.constant 0 : i32
    return %c0_i32, %c0_i32_0 : i32, i32
  }
  func.func @transform_3(%arg0: i32) -> (i32, i32) {
    %c0_i32 = arith.constant 0 : i32
    %c0_i32_0 = arith.constant 0 : i32
    return %arg0, %c0_i32 : i32, i32
  }
}

</mosaic_0001>

<bundles_post_ra>
// kernel: _lambda_.17
= control target key start
LH: loop header
LB: loop body
LE: loop exit
PB: predicated region body
PF: predicated region fallthrough
CT: control target
= control target key end

     0   :  { %vm16_vm0 = vcmask 261120   ;;  %v98_v4 = vmov 32.0   ;;  %vm82_vm6 = vcmask 257024   ;;  %s141_s0 = inlined_call_operand.vmem [shape: f32[16,32], index: 0, kind: input, shape index: {}]   ;;  %s142_s1 = inlined_call_operand.vmem [shape: f32[1,32], index: 1, kind: input, shape index: {}]   ;;  %s143_s2 = inlined_call_operand.vmem [shape: f32[1,32], index: 2, kind: input, shape index: {}]   ;;  %s144_s3 = inlined_call_operand.vmem [shape: bf16[16,32], index: 3, kind: output, shape index: {}]  }
   0x1   :  { %v14_v0 = vld [vmem:[%s141_s0] sm:$0xff]  ;;  %v15_v2 = vld [vmem:[%s141_s0 + $0x8] sm:$0xff]  ;;  %92 = vrcp.f32 %v98_v4 }
   0x2   :  { %v17_v1 = vsel %vm16_vm0, %v14_v0, 0.0  ;;  %v20_v3 = vsel %vm16_vm0, %v15_v2, 0.0  ;;  %v90_v35 = vld [vmem:[%s142_s1] ss:$0 sm:$0xff] }
   0x3   :  { %18 = vadd.xlane.f32.xlu0 %v17_v1  ;;  %v91_v38 = vld [vmem:[%s143_s2] ss:$0 sm:$0xff] }
   0x7   :  { %v93_v5 = vpop.eup %92 }
   0x8   :  { %v24_v6 = vmul.f32 32.0, %v93_v5  ;;  %vm28_vm1 = vweird.f32 %v93_v5 }
   0xa   :  { %v25_v7 = vsub.f32 1.0, %v24_v6 }
   0xb   :  { %21 = vadd.xlane.f32.xlu0 %v20_v3 }
   0xc   :  { %v26_v8 = vmul.f32 %v93_v5, %v25_v7 }
   0xe   :  { %v27_v9 = vadd.f32 %v93_v5, %v26_v8 }
  0x10   :  { %v29_v10 = vsel %vm28_vm1, %v93_v5, %v27_v9 }
  0x76   :  { %v19_v11 = vpop.xlane.xlu0 %18 }
  0x77   :  { %v30_v12 = vmul.f32 %v29_v10, %v19_v11 }
  0x79   :  { %v32_v13 = vsub.f32 %v14_v0, %v30_v12 }
  0x7b   :  { %v34_v14 = vmul.f32 %v32_v13, %v32_v13 }
  0x7d   :  { %v36_v15 = vsel %vm16_vm0, %v34_v14, 0.0 }
  0x7e   :  { %37 = vadd.xlane.f32.xlu1 %v36_v15  ;;  %v22_v16 = vpop.xlane.xlu0 %21 }
  0x7f   :  { %v31_v17 = vmul.f32 %v29_v10, %v22_v16 }
  0x81   :  { %v33_v18 = vsub.f32 %v15_v2, %v31_v17 }
  0x83   :  { %v35_v19 = vmul.f32 %v33_v18, %v33_v18 }
  0x85   :  { %v39_v20 = vsel %vm16_vm0, %v35_v19, 0.0 }
  0x86   :  { %40 = vadd.xlane.f32.xlu1 %v39_v20 }
  0xf1   :  { %v38_v21 = vpop.xlane.xlu1 %37 }
  0xf2   :  { %v42_v22 = vmul.f32 %v38_v21, %v29_v10 }
  0xf4   :  { %v44_v23 = vadd.f32 1e-12, %v42_v22 }
  0xf6   :  { %94 = vrsqrt.f32 %v44_v23  ;;  %vm52_vm3 = vweird.f32 %v44_v23 }
  0xf9   :  { %v41_v24 = vpop.xlane.xlu1 %40 }
  0xfa   :  { %v43_v25 = vmul.f32 %v41_v24, %v29_v10 }
  0xfc   :  { %v95_v26 = vpop.eup %94  ;;  %v45_v27 = vadd.f32 1e-12, %v43_v25 }
  0xfd   :  { %v47_v28 = vmul.f32 %v95_v26, %v44_v23  ;;  %vm53_vm2 = vweird.f32 %v95_v26 }
  0xfe   :  { %96 = vrsqrt.f32 %v45_v27  ;;  %vm54_vm4 = vmor %vm52_vm3, %vm53_vm2  ;;  %vm62_vm7 = vweird.f32 %v45_v27 }
  0xff   :  { %v48_v29 = vmul.f32 %v95_v26, %v47_v28 }
 0x101   :  { %v49_v30 = vmul.f32 0.5, %v48_v29 }
 0x103   :  { %v50_v31 = vsub.f32 1.5, %v49_v30 }
 0x104   :  { %v97_v32 = vpop.eup %96 }
 0x105   :  { %v51_v33 = vmul.f32 %v95_v26, %v50_v31  ;;  %v57_v34 = vmul.f32 %v97_v32, %v45_v27  ;;  %vm63_vm5 = vweird.f32 %v97_v32 }
 0x106   :  { %vm64_vm8 = vmor %vm62_vm7, %vm63_vm5 }
 0x107   :  { %v55_v36 = vsel %vm54_vm4, %v95_v26, %v51_v33  ;;  %v58_v37 = vmul.f32 %v97_v32, %v57_v34 }
 0x108   :  { %v66_v39 = vmul.f32 %v55_v36, %v32_v13 }
 0x109   :  { %v59_v40 = vmul.f32 0.5, %v58_v37 }
 0x10a   :  { %v72_v41 = vmul.f32 %v90_v35, %v66_v39 }
 0x10b   :  { %v60_v42 = vsub.f32 1.5, %v59_v40 }
 0x10c   :  { %v78_v43 = vadd.f32 %v91_v38, %v72_v41 }
 0x10d   :  { %v61_v44 = vmul.f32 %v97_v32, %v60_v42 }
 0x10e   :  { %v80_v45 = vpack.c.bf16 %v78_v43, %v78_v43 }
 0x10f   :  { %v65_v46 = vsel %vm64_vm8, %v97_v32, %v61_v44 }
 0x110   :  { %83 = vst.msk [vmem:[%s144_s3] sm:$0xf] %vm82_vm6, %v80_v45  ;;  %v67_v47 = vmul.f32 %v65_v46, %v33_v18 }
 0x112   :  { %v73_v48 = vmul.f32 %v90_v35, %v67_v47 }
 0x114   :  { %v79_v49 = vadd.f32 %v91_v38, %v73_v48 }
 0x116   :  { %v81_v50 = vpack.c.bf16 %v79_v49, %v79_v49 }
 0x118   :  { %84 = vst.msk [vmem:[%s144_s3 + $0x4] sm:$0xf] %vm82_vm6, %v81_v50 }

// kernel: _lambda_.18
= control target key start
LH: loop header
LB: loop body
LE: loop exit
PB: predicated region body
PF: predicated region fallthrough
CT: control target
= control target key end

     0   :  { %vm42_vm0 = vcmask 261120   ;;  %vm62_vm1 = vcmask 781312   ;;  %s124_s1 = inlined_call_operand.vmem [shape: bf16[32,96], index: 1, kind: input, shape index: {}]   ;;  %s125_s2 = inlined_call_operand.vmem [shape: f32[1,96], index: 2, kind: input, shape index: {}]   ;;  %s126_s0 = inlined_call_operand.vmem [shape: bf16[16,32], index: 0, kind: input, shape index: {}]   ;;  %s127_s3 = inlined_call_operand.vmem [shape: bf16[16,96], index: 3, kind: output, shape index: {}]  }
   0x1   :  { %v84_v0 = vld [vmem:[%s124_s1 + $0x8] sm:$0xff]  ;;  %v83_v1 = vld [vmem:[%s124_s1] sm:$0xff] }
   0x2   :  { %52 = vmatpush.bf16.msra.mxu0 %v84_v0  ;;  %v82_v2 = vld [vmem:[%s126_s0] sm:$0xff] }
   0x3   :  { %v85_v3 = vld [vmem:[%s125_s2] ss:$0 sm:$0xff] }
   0x6   :  { %53 = vmatpush.bf16.msra.mxu0 %v83_v1 }
   0x9   :  { %81 = vmatmul.msk.bf16.vlgmr.msra.gmra.mxu0 %vm42_vm0, %v82_v2 }
  0x86   :  { %v55_v4 = vpop.f32.mrf.mxu0 }
  0x87   :  { %v56_v5 = vadd.f32 %v85_v3, %v55_v4 }
  0x89   :  { %v60_v6 = vpack.c.bf16 %v56_v5, %v56_v5 }
  0x8b   :  { %63 = vst.msk [vmem:[%s127_s3] sm:$0xf] %vm62_vm1, %v60_v6 }
  0x8e   :  { %v57_v7 = vpop.f32.mrf.mxu0 }
  0x8f   :  { %v58_v8 = vadd.f32 %v85_v3, %v57_v7 }
  0x91   :  { %v61_v9 = vpack.c.bf16 %v58_v8, %v58_v8 }
  0x93   :  { %64 = vst.msk [vmem:[%s127_s3 + $0x4] sm:$0xf] %vm62_vm1, %v61_v9 }

// kernel: _lambda_.19
= control target key start
LH: loop header
LB: loop body
LE: loop exit
PB: predicated region body
PF: predicated region fallthrough
CT: control target
= control target key end

     0   :  { %s601_s15 = smov 0   ;;  %s603_s16 = smov 0   ;;  %s660_s0 = inlined_call_operand.vmem [shape: bf16[4,8,16], index: 0, kind: input, shape index: {}]   ;;  %s661_s1 = inlined_call_operand.vmem [shape: bf16[4,8,16], index: 1, kind: input, shape index: {}]   ;;  %s662_s2 = inlined_call_operand.vmem [shape: bf16[4,8,16], index: 2, kind: input, shape index: {}]   ;;  %s663_s3 = inlined_call_operand.vmem [shape: f32[4,1,8], index: 3, kind: input, shape index: {}]   ;;  %s664_s4 = inlined_call_operand.vmem [shape: bf16[4,8,16], index: 4, kind: output, shape index: {}]  }
   0x1   :  { %s605_s17 = smov 0  }
   0x2 LB: > { %s26_s18 = sadd.s32 1, %s567_s16  ;;  %p503_p0 = scmp.ge.s32.totalorder %s571_s17, 1  ;;  %s571_s17 = sphi %s605_s17, %s14_s17   ;;  %s567_s16 = sphi %s603_s16, %s666_s16   ;;  %s563_s15 = sphi %s601_s15, %s665_s15  }
   0x3   : > { %p28_p1 = scmp.ge.s32.totalorder %s26_s18, 4  ;;  %p214_p2 = scmp.lt.s32.totalorder %s571_s17, 5 }
   0x5   : > { %s668_s18 = smov (%p28_p1, %s26_s18), 0  ;;  %p215_p3 = pnand %p503_p0, %p214_p2 }
   0x6   : > { %p258_p4 = scmp.lt.s32.totalorder (!%p215_p3), %s563_s15, 3 }
   0x7   : > { %218 = sbr.rel (%p215_p3) target bundleno = 629 (0x275), region = 36 }
   0xc   : > { %vm291_vm0 = vcmask 7168   ;;  %v573_v0 = vmov 0.0   ;;  %vm294_vm1 = vcmask 130048   ;;  %s670_s15 = smov (!%p258_p4, %s563_s15), 3  ;;  %v574_v4 = vmov -1e+30  }
   0xd   : > { %293 = vst.msk [vmem:[#allocation3] sm:$0xff] %vm291_vm0, %v573_v0  ;;  %s621_s19 = sshll.u32 %s670_s15, 2  ;;  %s281_s28 = scalar_lea.vmem %s663_s3, %s670_s15  ;;  %vm326_vm2 = vcmask 64512   ;;  %v575_v11 = vmov 0   ;;  %vm361_vm3 = vcmask 1043456   ;;  %vm394_vm4 = vcmask 125952  }
   0xe   : > { %295 = vst.msk [vmem:[#allocation4] sm:$0xff] %vm294_vm1, %v573_v0  ;;  %s268_s22 = scalar_lea.vmem %s661_s1, %s621_s19  ;;  %s261_s25 = scalar_lea.vmem %s660_s0, %s621_s19  ;;  %v542_v5 = vld [vmem:[%s281_s28] ss:$0 sm:$0xff]  ;;  %539 = vset.pattern.permute.xlu0 %v575_v11  ;;  %540 = vset.pattern.permute.xlu1 %v575_v11 }
   0xf   : > { %v297_v1 = vld [vmem:[%s268_s22] sm:$0xf]  ;;  %292 = vst.msk [vmem:[#allocation2] sm:$0xff] %vm291_vm0, %v574_v4  ;;  %541 = vset.pattern.permute.xlu2 %v575_v11  ;;  %s275_s5 = scalar_lea.vmem %s662_s2, %s621_s19  ;;  %s285_s8 = scalar_lea.vmem %s664_s4, %s621_s19 }
  0x10   : > { %v304_v2 = vsel %vm294_vm1, %v297_v1, 0  ;;  %v296_v3 = vld [vmem:[%s261_s25] sm:$0xf] }
  0x11   : > { %313 = vmatpush.bf16.xpose.msra.mxu0 %v304_v2  ;;  %v298_v16 = vld [vmem:[%s275_s5] sm:$0xf] }
  0x12   : > { %v363_v17 = vsel %vm361_vm3, %v298_v16, 0 }
  0x13   : > { %372 = vmatpush.bf16.msra.mxu1 %v363_v17 }
  0x14   : > { %v342_v26 = vld [vmem:[#allocation3] sm:$0xff] }
  0x15   : > { %v350_v34 = vld [vmem:[#allocation4] sm:$0xff] }
  0x16   : > { %v325_v12 = vld [vmem:[#allocation2] sm:$0xff] }
  0x18   : > { %508 = vmatmul.msk.bf16.vlgmr.msra.gmra.mxu0 %vm294_vm1, %v296_v3 }
  0x95   : > { %v315_v6 = vpop.f32.mrf.mxu0 }
  0x96   : > { %v319_v7 = vmul.f32 0.25, %v315_v6 }
  0x98   : > { %v324_v8 = vadd.f32 %v542_v5, %v319_v7 }
  0x9a   : > { %v327_v9 = vsel %vm326_vm2, %v324_v8, -inf }
  0x9b   : > { %328 = vmax.xlane.f32.xlu0 %v327_v9 }
  0x9d   : > { %v317_v10 = vpop.f32.mrf.mxu0 }
 0x10e   : > { %v329_v13 = vpop.xlane.xlu0 %328 }
 0x10f   : > { %v330_v14 = vmax.f32 %v325_v12, %v329_v13 }
 0x111   : > { %v331_v15 = vsub.f32 %v325_v12, %v330_v14  ;;  %380 = vst.msk [vmem:[#allocation2] sm:$0xff] %vm291_vm0, %v330_v14  ;;  %336 = vperm.xlu0 %539, %v330_v14  }
 0x113   : > { %v332_v24 = vmul.f32 1.442695, %v331_v15 }
 0x183   : > { %v337_v18 = vpop.permute.xlu0 %336 }
 0x184   : > { %v339_v19 = vsub.f32 %v324_v8, %v337_v18 }
 0x186   : > { %v340_v20 = vmul.f32 1.442695, %v339_v19 }
 0x188   : > { %543 = vpow2.f32 %v340_v20 }
 0x189   : > { %545 = vpow2.f32 %v332_v24 }
 0x18e   : > { %v544_v21 = vpop.eup %543 }
 0x18f   : > { %v344_v22 = vsel %vm326_vm2, %v544_v21, 0.0  ;;  %v357_v23 = vpack.c.bf16 %v544_v21, %v544_v21  ;;  %v546_v25 = vpop.eup %545 }
 0x190   : > { %345 = vadd.xlane.f32.xlu1 %v344_v22  ;;  %v343_v27 = vmul.f32 %v546_v25, %v342_v26 }
 0x191   : > { %509 = vmatmul.msk.bf16.vlgmr.msra.gmra.mxu1 %vm326_vm2, %v357_v23 }
 0x1a9   : > { %353 = vperm.xlu1 %540, %v546_v25  }
 0x203   : > { %v346_v28 = vpop.xlane.xlu1 %345 }
 0x204   : > { %v347_v29 = vadd.f32 %v346_v28, %v343_v27 }
 0x206   : > { %349 = vst.msk [vmem:[#allocation3] sm:$0xff] %vm291_vm0, %v347_v29 }
 0x20d   : > { %v384_v30 = vld [vmem:[#allocation3] sm:$0xff] }
 0x20e   : > { %v374_v31 = vpop.f32.mrf.mxu1  ;;  %547 = vrcp.f32 %v384_v30 }
 0x214   : > { %v548_v32 = vpop.eup %547 }
 0x215   : > { %389 = vperm.xlu2 %541, %v548_v32  }
 0x216   : > { %v376_v33 = vpop.f32.mrf.mxu1 }
 0x21b   : > { %v354_v35 = vpop.permute.xlu1 %353 }
 0x21c   : > { %v356_v36 = vmul.f32 %v354_v35, %v350_v34 }
 0x21e   : > { %v378_v37 = vadd.f32 %v374_v31, %v356_v36 }
 0x220   : > { %379 = vst.msk [vmem:[#allocation4] sm:$0xff] %vm294_vm1, %v378_v37 }
 0x227   : > { %v386_v38 = vld [vmem:[#allocation4] sm:$0xff] }
 0x26f   : > { %v390_v39 = vpop.permute.xlu2 %389 }
 0x270   : > { %v392_v40 = vmul.f32 %v390_v39, %v386_v38 }
 0x272   : > { %v393_v41 = vpack.c.bf16 %v392_v40, %v392_v40 }
 0x274   : > { %395 = vst.msk [vmem:[%s285_s8] sm:$0xf] %vm394_vm4, %v393_v41 }
 0x275 PF: > { %s14_s17 = sadd.s32 1, %s571_s17   ;;  %s665_s15 = smov %s567_s16 }
 0x276   : > { %p11_p5 = scmp.ge.s32.totalorder %s14_s17, 6   ;;  %s666_s16 = smov %s668_s18 }
 0x278   :  { %13 = sbr.rel (!%p11_p5) target bundleno = 2 (0x2), region = 83 }

// kernel: _lambda_.20
= control target key start
LH: loop header
LB: loop body
LE: loop exit
PB: predicated region body
PF: predicated region fallthrough
CT: control target
= control target key end

     0   :  { %vm51_vm0 = vcmask 261120   ;;  %v177_v15 = vmov 32.0   ;;  %vm140_vm6 = vcmask 257024   ;;  %s245_s2 = inlined_call_operand.vmem [shape: bf16[32,32], index: 2, kind: input, shape index: {}]   ;;  %s246_s3 = inlined_call_operand.vmem [shape: f32[1,32], index: 3, kind: input, shape index: {}]   ;;  %s247_s0 = inlined_call_operand.vmem [shape: bf16[16,32], index: 0, kind: input, shape index: {}]   ;;  %s248_s1 = inlined_call_operand.vmem [shape: bf16[16,32], index: 1, kind: input, shape index: {}]   ;;  %s249_s4 = inlined_call_operand.vmem [shape: f32[1,32], index: 4, kind: input, shape index: {}]   ;;  %s250_s5 = inlined_call_operand.vmem [shape: f32[1,32], index: 5, kind: input, shape index: {}]   ;;  %s251_s6 = inlined_call_operand.vmem [shape: bf16[16,32], index: 6, kind: output, shape index: {}]  }
   0x1   :  { %v162_v0 = vld [vmem:[%s245_s2 + $0x8] sm:$0xff]  ;;  %v161_v1 = vld [vmem:[%s245_s2] sm:$0xff]  ;;  %171 = vrcp.f32 %v177_v15 }
   0x2   :  { %61 = vmatpush.bf16.msra.mxu0 %v162_v0  ;;  %v160_v2 = vld [vmem:[%s247_s0] sm:$0xff] }
   0x3   :  { %v164_v3 = vld [vmem:[%s248_s1] sm:$0xff]  }
   0x4   :  { %v168_v4 = vld [vmem:[%s246_s3] ss:$0 sm:$0xff]  ;;  %v165_v5 = vunpack.c.l.bf16 %v164_v3  ;;  %v166_v10 = vunpack.c.h.bf16 %v164_v3 }
   0x5   :  { %v169_v46 = vld [vmem:[%s249_s4] ss:$0 sm:$0xff] }
   0x6   :  { %62 = vmatpush.bf16.msra.mxu0 %v161_v1  ;;  %v170_v49 = vld [vmem:[%s250_s5] ss:$0 sm:$0xff] }
   0x7   :  { %v172_v16 = vpop.eup %171 }
   0x8   :  { %v82_v17 = vmul.f32 32.0, %v172_v16  ;;  %vm86_vm1 = vweird.f32 %v172_v16 }
   0x9   :  { %159 = vmatmul.msk.bf16.vlgmr.msra.gmra.mxu0 %vm51_vm0, %v160_v2 }
   0xa   :  { %v83_v18 = vsub.f32 1.0, %v82_v17 }
   0xc   :  { %v84_v19 = vmul.f32 %v172_v16, %v83_v18 }
   0xe   :  { %v85_v20 = vadd.f32 %v172_v16, %v84_v19 }
  0x10   :  { %v87_v21 = vsel %vm86_vm1, %v172_v16, %v85_v20 }
  0x86   :  { %v64_v6 = vpop.f32.mrf.mxu0 }
  0x87   :  { %v65_v7 = vadd.f32 %v168_v4, %v64_v6 }
  0x89   :  { %v73_v8 = vadd.f32 %v165_v5, %v65_v7 }
  0x8b   :  { %v75_v9 = vsel %vm51_vm0, %v73_v8, 0.0 }
  0x8c   :  { %76 = vadd.xlane.f32.xlu0 %v75_v9 }
  0x8e   :  { %v66_v11 = vpop.f32.mrf.mxu0 }
  0x8f   :  { %v67_v12 = vadd.f32 %v168_v4, %v66_v11 }
  0x91   :  { %v74_v13 = vadd.f32 %v166_v10, %v67_v12 }
  0x93   :  { %v78_v14 = vsel %vm51_vm0, %v74_v13, 0.0 }
  0x94   :  { %79 = vadd.xlane.f32.xlu0 %v78_v14 }
  0xff   :  { %v77_v22 = vpop.xlane.xlu0 %76 }
 0x100   :  { %v88_v23 = vmul.f32 %v87_v21, %v77_v22 }
 0x102   :  { %v90_v24 = vsub.f32 %v73_v8, %v88_v23 }
 0x104   :  { %v92_v25 = vmul.f32 %v90_v24, %v90_v24 }
 0x106   :  { %v94_v26 = vsel %vm51_vm0, %v92_v25, 0.0 }
 0x107   :  { %95 = vadd.xlane.f32.xlu1 %v94_v26  ;;  %v80_v27 = vpop.xlane.xlu0 %79 }
 0x108   :  { %v89_v28 = vmul.f32 %v87_v21, %v80_v27 }
 0x10a   :  { %v91_v29 = vsub.f32 %v74_v13, %v89_v28 }
 0x10c   :  { %v93_v30 = vmul.f32 %v91_v29, %v91_v29 }
 0x10e   :  { %v97_v31 = vsel %vm51_vm0, %v93_v30, 0.0 }
 0x10f   :  { %98 = vadd.xlane.f32.xlu1 %v97_v31 }
 0x17a   :  { %v96_v32 = vpop.xlane.xlu1 %95 }
 0x17b   :  { %v100_v33 = vmul.f32 %v96_v32, %v87_v21 }
 0x17d   :  { %v102_v34 = vadd.f32 1e-12, %v100_v33 }
 0x17f   :  { %173 = vrsqrt.f32 %v102_v34  ;;  %vm110_vm3 = vweird.f32 %v102_v34 }
 0x182   :  { %v99_v35 = vpop.xlane.xlu1 %98 }
 0x183   :  { %v101_v36 = vmul.f32 %v99_v35, %v87_v21 }
 0x185   :  { %v174_v37 = vpop.eup %173  ;;  %v103_v38 = vadd.f32 1e-12, %v101_v36 }
 0x186   :  { %v105_v39 = vmul.f32 %v174_v37, %v102_v34  ;;  %vm111_vm2 = vweird.f32 %v174_v37 }
 0x187   :  { %175 = vrsqrt.f32 %v103_v38  ;;  %vm112_vm4 = vmor %vm110_vm3, %vm111_vm2  ;;  %vm120_vm7 = vweird.f32 %v103_v38 }
 0x188   :  { %v106_v40 = vmul.f32 %v174_v37, %v105_v39 }
 0x18a   :  { %v107_v41 = vmul.f32 0.5, %v106_v40 }
 0x18c   :  { %v108_v42 = vsub.f32 1.5, %v107_v41 }
 0x18d   :  { %v176_v43 = vpop.eup %175 }
 0x18e   :  { %v109_v44 = vmul.f32 %v174_v37, %v108_v42  ;;  %v115_v45 = vmul.f32 %v176_v43, %v103_v38  ;;  %vm121_vm5 = vweird.f32 %v176_v43 }
 0x18f   :  { %vm122_vm8 = vmor %vm120_vm7, %vm121_vm5 }
 0x190   :  { %v113_v47 = vsel %vm112_vm4, %v174_v37, %v109_v44  ;;  %v116_v48 = vmul.f32 %v176_v43, %v115_v45 }
 0x191   :  { %v124_v50 = vmul.f32 %v113_v47, %v90_v24 }
 0x192   :  { %v117_v51 = vmul.f32 0.5, %v116_v48 }
 0x193   :  { %v130_v52 = vmul.f32 %v169_v46, %v124_v50 }
 0x194   :  { %v118_v53 = vsub.f32 1.5, %v117_v51 }
 0x195   :  { %v136_v54 = vadd.f32 %v170_v49, %v130_v52 }
 0x196   :  { %v119_v55 = vmul.f32 %v176_v43, %v118_v53 }
 0x197   :  { %v138_v56 = vpack.c.bf16 %v136_v54, %v136_v54 }
 0x198   :  { %v123_v57 = vsel %vm122_vm8, %v176_v43, %v119_v55 }
 0x199   :  { %141 = vst.msk [vmem:[%s251_s6] sm:$0xf] %vm140_vm6, %v138_v56  ;;  %v125_v58 = vmul.f32 %v123_v57, %v91_v29 }
 0x19b   :  { %v131_v59 = vmul.f32 %v169_v46, %v125_v58 }
 0x19d   :  { %v137_v60 = vadd.f32 %v170_v49, %v131_v59 }
 0x19f   :  { %v139_v61 = vpack.c.bf16 %v137_v60, %v137_v60 }
 0x1a1   :  { %142 = vst.msk [vmem:[%s251_s6 + $0x4] sm:$0xf] %vm140_vm6, %v139_v61 }

// kernel: _lambda_.21
= control target key start
LH: loop header
LB: loop body
LE: loop exit
PB: predicated region body
PF: predicated region fallthrough
CT: control target
= control target key end

     0   :  { %vm42_vm0 = vcmask 261120   ;;  %vm80_vm1 = vcmask 519168   ;;  %s146_s1 = inlined_call_operand.vmem [shape: bf16[32,64], index: 1, kind: input, shape index: {}]   ;;  %s147_s2 = inlined_call_operand.vmem [shape: f32[1,64], index: 2, kind: input, shape index: {}]   ;;  %s148_s0 = inlined_call_operand.vmem [shape: bf16[16,32], index: 0, kind: input, shape index: {}]   ;;  %s149_s3 = inlined_call_operand.vmem [shape: bf16[16,64], index: 3, kind: output, shape index: {}]  }
   0x1   :  { %v102_v0 = vld [vmem:[%s146_s1 + $0x8] sm:$0xff]  ;;  %v101_v1 = vld [vmem:[%s146_s1] sm:$0xff] }
   0x2   :  { %52 = vmatpush.bf16.msra.mxu0 %v102_v0  ;;  %v100_v2 = vld [vmem:[%s148_s0] sm:$0xff] }
   0x3   :  { %v103_v3 = vld [vmem:[%s147_s2] ss:$0 sm:$0xff] }
   0x6   :  { %53 = vmatpush.bf16.msra.mxu0 %v101_v1 }
   0x9   :  { %99 = vmatmul.msk.bf16.vlgmr.msra.gmra.mxu0 %vm42_vm0, %v100_v2 }
  0x86   :  { %v55_v4 = vpop.f32.mrf.mxu0 }
  0x87   :  { %v56_v5 = vadd.f32 %v103_v3, %v55_v4 }
  0x89   :  { %v60_v6 = vmul.f32 %v56_v5, %v56_v5 }
  0x8b   :  { %v62_v7 = vmul.f32 %v60_v6, %v56_v5 }
  0x8d   :  { %v64_v8 = vmul.f32 0.044715, %v62_v7 }
  0x8e   :  { %v57_v9 = vpop.f32.mrf.mxu0 }
  0x8f   :  { %v66_v10 = vadd.f32 %v64_v8, %v56_v5  ;;  %v58_v11 = vadd.f32 %v103_v3, %v57_v9 }
  0x91   :  { %v68_v12 = vmul.f32 0.7978846, %v66_v10  ;;  %v61_v13 = vmul.f32 %v58_v11, %v58_v11 }
  0x93   :  { %104 = vtanh.f32 %v68_v12  ;;  %v63_v14 = vmul.f32 %v61_v13, %v58_v11 }
  0x95   :  { %v65_v15 = vmul.f32 0.044715, %v63_v14 }
  0x97   :  { %v67_v16 = vadd.f32 %v65_v15, %v58_v11 }
  0x99   :  { %v105_v17 = vpop.eup %104  ;;  %v69_v18 = vmul.f32 0.7978846, %v67_v16 }
  0x9a   :  { %v72_v19 = vadd.f32 1.0, %v105_v17 }
  0x9b   :  { %106 = vtanh.f32 %v69_v18 }
  0x9c   :  { %v74_v20 = vmul.f32 0.5, %v72_v19 }
  0x9e   :  { %v76_v21 = vmul.f32 %v74_v20, %v56_v5 }
  0xa0   :  { %v78_v22 = vpack.c.bf16 %v76_v21, %v76_v21 }
  0xa1   :  { %v107_v23 = vpop.eup %106 }
  0xa2   :  { %81 = vst.msk [vmem:[%s149_s3] sm:$0xf] %vm80_vm1, %v78_v22  ;;  %v73_v24 = vadd.f32 1.0, %v107_v23 }
  0xa4   :  { %v75_v25 = vmul.f32 0.5, %v73_v24 }
  0xa6   :  { %v77_v26 = vmul.f32 %v75_v25, %v58_v11 }
  0xa8   :  { %v79_v27 = vpack.c.bf16 %v77_v26, %v77_v26 }
  0xaa   :  { %82 = vst.msk [vmem:[%s149_s3 + $0x4] sm:$0xf] %vm80_vm1, %v79_v27 }

// kernel: _lambda_.22
= control target key start
LH: loop header
LB: loop body
LE: loop exit
PB: predicated region body
PF: predicated region fallthrough
CT: control target
= control target key end

     0   :  { %vm67_vm0 = vcmask 523264   ;;  %vm91_vm1 = vcmask 261120   ;;  %v204_v17 = vmov 32.0   ;;  %vm157_vm7 = vcmask 257024   ;;  %s277_s2 = inlined_call_operand.vmem [shape: bf16[64,32], index: 2, kind: input, shape index: {}]   ;;  %s278_s3 = inlined_call_operand.vmem [shape: f32[1,32], index: 3, kind: input, shape index: {}]   ;;  %s279_s0 = inlined_call_operand.vmem [shape: bf16[16,64], index: 0, kind: input, shape index: {}]   ;;  %s280_s1 = inlined_call_operand.vmem [shape: bf16[16,32], index: 1, kind: input, shape index: {}]   ;;  %s281_s4 = inlined_call_operand.vmem [shape: f32[1,32], index: 4, kind: input, shape index: {}]   ;;  %s282_s5 = inlined_call_operand.vmem [shape: f32[1,32], index: 5, kind: input, shape index: {}]   ;;  %s283_s6 = inlined_call_operand.vmem [shape: bf16[16,32], index: 6, kind: output, shape index: {}]  }
   0x1   :  { %v189_v0 = vld [vmem:[%s277_s2 + $0x18] sm:$0xff]  ;;  %v188_v1 = vld [vmem:[%s277_s2 + $0x10] sm:$0xff]  ;;  %v187_v2 = vld [vmem:[%s277_s2 + $0x8] sm:$0xff]  ;;  %198 = vrcp.f32 %v204_v17 }
   0x2   :  { %75 = vmatpush.bf16.msra.mxu0 %v189_v0  ;;  %v186_v3 = vld [vmem:[%s277_s2] sm:$0xff] }
   0x3   :  { %v185_v4 = vld [vmem:[%s279_s0] sm:$0xff] }
   0x4   :  { %v191_v5 = vld [vmem:[%s280_s1] sm:$0xff]  }
   0x5   :  { %v195_v6 = vld [vmem:[%s278_s3] ss:$0 sm:$0xff]  ;;  %v192_v7 = vunpack.c.l.bf16 %v191_v5  ;;  %v193_v12 = vunpack.c.h.bf16 %v191_v5 }
   0x6   :  { %76 = vmatpush.bf16.msra.mxu0 %v188_v1  ;;  %v196_v48 = vld [vmem:[%s281_s4] ss:$0 sm:$0xff] }
   0x7   :  { %v199_v18 = vpop.eup %198  ;;  %v197_v51 = vld [vmem:[%s282_s5] ss:$0 sm:$0xff] }
   0x8   :  { %v99_v19 = vmul.f32 32.0, %v199_v18  ;;  %vm103_vm2 = vweird.f32 %v199_v18 }
   0xa   :  { %77 = vmatpush.bf16.msra.mxu0 %v187_v2  ;;  %v100_v20 = vsub.f32 1.0, %v99_v19 }
   0xc   :  { %v101_v21 = vmul.f32 %v199_v18, %v100_v20 }
   0xe   :  { %78 = vmatpush.bf16.msra.mxu0 %v186_v3  ;;  %v102_v22 = vadd.f32 %v199_v18, %v101_v21 }
  0x10   :  { %v104_v23 = vsel %vm103_vm2, %v199_v18, %v102_v22 }
  0x11   :  { %184 = vmatmul.msk.bf16.vlgmr.msra.gmra.mxu0 %vm67_vm0, %v185_v4 }
  0x8e   :  { %v80_v8 = vpop.f32.mrf.mxu0 }
  0x8f   :  { %v81_v9 = vadd.f32 %v195_v6, %v80_v8 }
  0x91   :  { %v89_v10 = vadd.f32 %v192_v7, %v81_v9 }
  0x93   :  { %v92_v11 = vsel %vm91_vm1, %v89_v10, 0.0 }
  0x94   :  { %93 = vadd.xlane.f32.xlu0 %v92_v11 }
  0x96   :  { %v82_v13 = vpop.f32.mrf.mxu0 }
  0x97   :  { %v83_v14 = vadd.f32 %v195_v6, %v82_v13 }
  0x99   :  { %v90_v15 = vadd.f32 %v193_v12, %v83_v14 }
  0x9b   :  { %v95_v16 = vsel %vm91_vm1, %v90_v15, 0.0 }
  0x9c   :  { %96 = vadd.xlane.f32.xlu0 %v95_v16 }
 0x107   :  { %v94_v24 = vpop.xlane.xlu0 %93 }
 0x108   :  { %v105_v25 = vmul.f32 %v104_v23, %v94_v24 }
 0x10a   :  { %v107_v26 = vsub.f32 %v89_v10, %v105_v25 }
 0x10c   :  { %v109_v27 = vmul.f32 %v107_v26, %v107_v26 }
 0x10e   :  { %v111_v28 = vsel %vm91_vm1, %v109_v27, 0.0 }
 0x10f   :  { %112 = vadd.xlane.f32.xlu1 %v111_v28  ;;  %v97_v29 = vpop.xlane.xlu0 %96 }
 0x110   :  { %v106_v30 = vmul.f32 %v104_v23, %v97_v29 }
 0x112   :  { %v108_v31 = vsub.f32 %v90_v15, %v106_v30 }
 0x114   :  { %v110_v32 = vmul.f32 %v108_v31, %v108_v31 }
 0x116   :  { %v114_v33 = vsel %vm91_vm1, %v110_v32, 0.0 }
 0x117   :  { %115 = vadd.xlane.f32.xlu1 %v114_v33 }
 0x182   :  { %v113_v34 = vpop.xlane.xlu1 %112 }
 0x183   :  { %v117_v35 = vmul.f32 %v113_v34, %v104_v23 }
 0x185   :  { %v119_v36 = vadd.f32 1e-12, %v117_v35 }
 0x187   :  { %200 = vrsqrt.f32 %v119_v36  ;;  %vm127_vm4 = vweird.f32 %v119_v36 }
 0x18a   :  { %v116_v37 = vpop.xlane.xlu1 %115 }
 0x18b   :  { %v118_v38 = vmul.f32 %v116_v37, %v104_v23 }
 0x18d   :  { %v201_v39 = vpop.eup %200  ;;  %v120_v40 = vadd.f32 1e-12, %v118_v38 }
 0x18e   :  { %v122_v41 = vmul.f32 %v201_v39, %v119_v36  ;;  %vm128_vm3 = vweird.f32 %v201_v39 }
 0x18f   :  { %202 = vrsqrt.f32 %v120_v40  ;;  %vm129_vm5 = vmor %vm127_vm4, %vm128_vm3  ;;  %vm137_vm8 = vweird.f32 %v120_v40 }
 0x190   :  { %v123_v42 = vmul.f32 %v201_v39, %v122_v41 }
 0x192   :  { %v124_v43 = vmul.f32 0.5, %v123_v42 }
 0x194   :  { %v125_v44 = vsub.f32 1.5, %v124_v43 }
 0x195   :  { %v203_v45 = vpop.eup %202 }
 0x196   :  { %v126_v46 = vmul.f32 %v201_v39, %v125_v44  ;;  %v132_v47 = vmul.f32 %v203_v45, %v120_v40  ;;  %vm138_vm6 = vweird.f32 %v203_v45 }
 0x197   :  { %vm139_vm9 = vmor %vm137_vm8, %vm138_vm6 }
 0x198   :  { %v130_v49 = vsel %vm129_vm5, %v201_v39, %v126_v46  ;;  %v133_v50 = vmul.f32 %v203_v45, %v132_v47 }
 0x199   :  { %v141_v52 = vmul.f32 %v130_v49, %v107_v26 }
 0x19a   :  { %v134_v53 = vmul.f32 0.5, %v133_v50 }
 0x19b   :  { %v147_v54 = vmul.f32 %v196_v48, %v141_v52 }
 0x19c   :  { %v135_v55 = vsub.f32 1.5, %v134_v53 }
 0x19d   :  { %v153_v56 = vadd.f32 %v197_v51, %v147_v54 }
 0x19e   :  { %v136_v57 = vmul.f32 %v203_v45, %v135_v55 }
 0x19f   :  { %v155_v58 = vpack.c.bf16 %v153_v56, %v153_v56 }
 0x1a0   :  { %v140_v59 = vsel %vm139_vm9, %v203_v45, %v136_v57 }
 0x1a1   :  { %158 = vst.msk [vmem:[%s283_s6] sm:$0xf] %vm157_vm7, %v155_v58  ;;  %v142_v60 = vmul.f32 %v140_v59, %v108_v31 }
 0x1a3   :  { %v148_v61 = vmul.f32 %v196_v48, %v142_v60 }
 0x1a5   :  { %v154_v62 = vadd.f32 %v197_v51, %v148_v61 }
 0x1a7   :  { %v156_v63 = vpack.c.bf16 %v154_v62, %v154_v62 }
 0x1a9   :  { %159 = vst.msk [vmem:[%s283_s6 + $0x4] sm:$0xf] %vm157_vm7, %v156_v63 }

// kernel: _lambda_.28
= control target key start
LH: loop header
LB: loop body
LE: loop exit
PB: predicated region body
PF: predicated region fallthrough
CT: control target
= control target key end

     0   :  { %vm42_vm0 = vcmask 261120   ;;  %vm60_vm1 = vcmask 523264   ;;  %s122_s1 = inlined_call_operand.vmem [shape: bf16[32,64], index: 1, kind: input, shape index: {}]   ;;  %s123_s2 = inlined_call_operand.vmem [shape: f32[1,64], index: 2, kind: input, shape index: {}]   ;;  %s124_s0 = inlined_call_operand.vmem [shape: bf16[16,32], index: 0, kind: input, shape index: {}]   ;;  %s125_s3 = inlined_call_operand.vmem [shape: f32[16,64], index: 3, kind: output, shape index: {}]  }
   0x1   :  { %v82_v0 = vld [vmem:[%s122_s1 + $0x8] sm:$0xff]  ;;  %v81_v1 = vld [vmem:[%s122_s1] sm:$0xff] }
   0x2   :  { %52 = vmatpush.bf16.msra.mxu0 %v82_v0  ;;  %v80_v2 = vld [vmem:[%s124_s0] sm:$0xff] }
   0x3   :  { %v83_v3 = vld [vmem:[%s123_s2] ss:$0 sm:$0xff] }
   0x6   :  { %53 = vmatpush.bf16.msra.mxu0 %v81_v1 }
   0x9   :  { %79 = vmatmul.msk.bf16.vlgmr.msra.gmra.mxu0 %vm42_vm0, %v80_v2 }
  0x86   :  { %v55_v4 = vpop.f32.mrf.mxu0 }
  0x87   :  { %v56_v5 = vadd.f32 %v83_v3, %v55_v4 }
  0x89   :  { %61 = vst.msk [vmem:[%s125_s3] sm:$0xff] %vm60_vm1, %v56_v5 }
  0x8e   :  { %v57_v6 = vpop.f32.mrf.mxu0 }
  0x8f   :  { %v58_v7 = vadd.f32 %v83_v3, %v57_v6 }
  0x91   :  { %62 = vst.msk [vmem:[%s125_s3 + $0x8] sm:$0xff] %vm60_vm1, %v58_v7 }

// kernel: _lambda_.30
= control target key start
LH: loop header
LB: loop body
LE: loop exit
PB: predicated region body
PF: predicated region fallthrough
CT: control target
= control target key end

     0   :  { %s351_s9 = smov 0   ;;  %s374_s0 = inlined_call_operand.vmem [shape: f32[8,2,64], index: 0, kind: input, shape index: {}]   ;;  %s375_s1 = inlined_call_operand.vmem [shape: bf16[16,64], index: 1, kind: input, shape index: {}]   ;;  %s376_s2 = inlined_call_operand.vmem [shape: f32[8,2,16], index: 2, kind: output, shape index: {}]  }
   0x1 LB: > { %s283_s10 = sadd.s32 4294967295, %s328_s9   ;;  %p287_p0 = scmp.ge.s32.totalorder %s328_s9, 1  ;;  %s328_s9 = sphi %s351_s9, %s12_s9  }
   0x2   : > { %p111_p1 = scmp.lt.s32.totalorder %s328_s9, 9 }
   0x4   : > { %p112_p2 = pnand %p287_p0, %p111_p1 }
   0x5   : > { %p131_p3 = scmp.lt.s32.totalorder (!%p112_p2), %s283_s10, 7  ;;  %p290_p4 = scmp.ne.s32.totalorder (!%p112_p2), %s283_s10, 0 }
   0x6   : > { %115 = sbr.rel (%p112_p2) target bundleno = 614 (0x266), region = 28 }
   0xb   : > { %s132_s11 = scalar_select %p131_p3, %s283_s10, 7 }
   0xc   : > { %143 = sbr.rel (%p290_p4) target bundleno = 20 (0x14), region = 32 }
   0xd   : > { %s288_s12 = sshll.u32 %s132_s11, 1 }
   0xe   : > { %s134_s15 = scalar_lea.vmem %s374_s0, %s288_s12  ;;  %s365_s18 = scalar_lea.vmem %s376_s2, %s288_s12 }
  0x11   : > { %vm144_vm0 = vcmask 123904   ;;  %v330_v0 = vmov 0.0  }
  0x12   : > { %145 = vst.msk [vmem:[#allocation2] sm:$0x3] %vm144_vm0, %v330_v0 }
  0x13   : > { %146 = vst.msk [vmem:[#allocation3] sm:$0x3] %vm144_vm0, %v330_v0 }
  0x14 PF: > { %v299_v1 = vld [vmem:[%s375_s1] sm:$0xff]  ;;  %vm158_vm1 = vcmask 130048   ;;  %s331_s21 = smov 96   ;;  %s332_s22 = smov 16   ;;  %vm222_vm6 = vcmask 123904  }
  0x15   : > { %169 = vmatpush.bf16.msra.mxu0 %v299_v1  ;;  %v148_v4 = vld [vmem:[%s134_s15] sm:$0x3]  ;;  %s333_s23 = smov 112   ;;  %s334_s24 = smov 32  }
  0x16   : > { %s335_s25 = smov 80  }
  0x19   : > { %v147_v2 = vld [vmem:[#allocation2] sm:$0x3] }
  0x1a   : > { %v149_v3 = vpack.c.bf16 %v147_v2, %v147_v2  ;;  %v196_v9 = vld [vmem:[#allocation3] sm:$0x3] }
  0x1c   : > { %295 = vmatmul.msk.bf16.vlgmr.msra.gmra.mxu0 %vm158_vm1, %v149_v3 }
  0x99   : > { %v171_v5 = vpop.f32.mrf.mxu0 }
  0x9a   : > { %v175_v6 = vadd.f32 %v171_v5, %v148_v4 }
  0x9c   : > { %314 = vtanh.f32 %v175_v6  ;;  %v296_v10 = vmul.f32 -1.442695, %v175_v6 }
  0x9e   : > { %316 = vpow2.f32 %v296_v10 }
  0xa1   : > { %v173_v7 = vpop.f32.mrf.mxu0 }
  0xa2   : > { %v315_v8 = vpop.eup %314 }
  0xa3   : > { %203 = vrot.lane.b32.xlu0 %v315_v8, %s331_s21 }
  0xa4   : > { %v317_v11 = vpop.eup %316 }
  0xa5   : > { %v179_v12 = vadd.f32 1.0, %v317_v11 }
  0xa7   : > { %318 = vrcp.f32 %v179_v12  ;;  %v191_v18 = vand.u32 2147483648, %v179_v12  ;;  %vm185_vm3 = vweird.f32 %v179_v12  ;;  %v189_v19 = vand.u32 2147483647, %v179_v12 }
  0xa9   : > { %v192_v21 = vor.u32 1.1754944e-38, %v191_v18  ;;  %vm190_vm5 = vcmp.eq.f32.partialorder %v189_v19, 8.507059e+37 }
  0xab   : > { %198 = vrot.lane.b32.xlu0 %v196_v9, %s332_s22 }
  0xad   : > { %v319_v13 = vpop.eup %318 }
  0xae   : > { %v181_v14 = vmul.f32 %v319_v13, %v179_v12  ;;  %vm186_vm2 = vweird.f32 %v319_v13 }
  0xaf   : > { %vm187_vm4 = vmor %vm185_vm3, %vm186_vm2 }
  0xb0   : > { %v182_v15 = vsub.f32 1.0, %v181_v14 }
  0xb2   : > { %v183_v16 = vmul.f32 %v319_v13, %v182_v15 }
  0xb4   : > { %v184_v17 = vadd.f32 %v319_v13, %v183_v16 }
  0xb6   : > { %v188_v20 = vsel %vm187_vm4, %v319_v13, %v184_v17 }
  0xb7   : > { %v193_v23 = vsel %vm190_vm5, %v192_v21, %v188_v20 }
 0x115   : > { %v204_v22 = vpop.permute.xlu0 %203 }
 0x116   : > { %v206_v24 = vmul.f32 %v204_v22, %v193_v23 }
 0x118   : > { %208 = vrot.lane.b32.xlu1 %v206_v24, %s332_s22 }
 0x11d   : > { %v199_v25 = vpop.permute.xlu0 %198 }
 0x11e   : > { %v201_v26 = vmul.f32 %v199_v25, %v193_v23 }
 0x18a   : > { %v209_v27 = vpop.permute.xlu1 %208 }
 0x18b   : > { %v211_v28 = vadd.f32 %v209_v27, %v201_v26 }
 0x18d   : > { %320 = vtanh.f32 %v211_v28  ;;  %219 = vrot.lane.b32.xlu2 %v211_v28, %s333_s23 }
 0x193   : > { %v321_v29 = vpop.eup %320 }
 0x194   : > { %214 = vrot.lane.b32.xlu1 %v321_v29, %s334_s24 }
 0x1e7   : > { %v220_v30 = vpop.permute.xlu2 %219 }
 0x1e8   : > { %223 = vst.msk [vmem:[#allocation3] sm:$0x3] %vm222_vm6, %v220_v30 }
 0x206   : > { %v215_v31 = vpop.permute.xlu1 %214 }
 0x207   : > { %v217_v32 = vmul.f32 %v215_v31, %v193_v23 }
 0x209   : > { %225 = vrot.lane.b32.xlu2 %v217_v32, %s335_s25 }
 0x263   : > { %v226_v33 = vpop.permute.xlu2 %225 }
 0x264   : > { %228 = vst.msk [vmem:[#allocation2] sm:$0x3] %vm222_vm6, %v226_v33 }
 0x265   : > { %229 = vst.msk [vmem:[%s365_s18] sm:$0x3] %vm222_vm6, %v226_v33 }
 0x266 PF: > { %s12_s9 = sadd.s32 1, %s328_s9  }
 0x267   : > { %p9_p5 = scmp.ge.s32.totalorder %s12_s9, 10  }
 0x269   :  { %11 = sbr.rel (!%p9_p5) target bundleno = 1 (0x1), region = 62 }

// kernel: _lambda_.31
= control target key start
LH: loop header
LB: loop body
LE: loop exit
PB: predicated region body
PF: predicated region fallthrough
CT: control target
= control target key end

     0   :  { %s366_s9 = smov 0   ;;  %s389_s0 = inlined_call_operand.vmem [shape: f32[8,2,64], index: 0, kind: input, shape index: {}]   ;;  %s390_s1 = inlined_call_operand.vmem [shape: bf16[16,64], index: 1, kind: input, shape index: {}]   ;;  %s391_s2 = inlined_call_operand.vmem [shape: f32[8,2,16], index: 2, kind: output, shape index: {}]  }
   0x1 LB: > { %s298_s10 = sadd.s32 4294967295, %s343_s9   ;;  %p302_p0 = scmp.ge.s32.totalorder %s343_s9, 1  ;;  %s343_s9 = sphi %s366_s9, %s12_s9  }
   0x2   : > { %p117_p1 = scmp.lt.s32.totalorder %s343_s9, 9 }
   0x4   : > { %p118_p2 = pnand %p302_p0, %p117_p1 }
   0x5   : > { %s139_s11 = ssub.s32 (!%p118_p2), 7, %s298_s10  ;;  %p305_p4 = scmp.ne.s32.totalorder (!%p118_p2), %s298_s10, 0 }
   0x6   : > { %121 = sbr.rel (%p118_p2) target bundleno = 613 (0x265), region = 28  ;;  %p140_p3 = scmp.lt.s32.totalorder (!%p118_p2), %s139_s11, 7 }
   0xb   : > { %s393_s11 = smov (!%p140_p3, %s139_s11), 7  ;;  %155 = sbr.rel (%p305_p4) target bundleno = 19 (0x13), region = 32 }
   0xc   : > { %s303_s12 = sshll.u32 %s393_s11, 1 }
   0xd   : > { %s143_s15 = scalar_lea.vmem %s389_s0, %s303_s12  ;;  %s380_s18 = scalar_lea.vmem %s391_s2, %s303_s12 }
  0x10   : > { %vm156_vm0 = vcmask 123904   ;;  %v345_v0 = vmov 0.0  }
  0x11   : > { %157 = vst.msk [vmem:[#allocation2] sm:$0x3] %vm156_vm0, %v345_v0 }
  0x12   : > { %158 = vst.msk [vmem:[#allocation3] sm:$0x3] %vm156_vm0, %v345_v0 }
  0x13 PF: > { %v314_v1 = vld [vmem:[%s390_s1] sm:$0xff]  ;;  %vm170_vm1 = vcmask 130048   ;;  %s346_s21 = smov 96   ;;  %s347_s22 = smov 16   ;;  %vm234_vm6 = vcmask 123904  }
  0x14   : > { %181 = vmatpush.bf16.msra.mxu0 %v314_v1  ;;  %v160_v4 = vld [vmem:[%s143_s15] sm:$0x3]  ;;  %s348_s23 = smov 112   ;;  %s349_s24 = smov 32  }
  0x15   : > { %s350_s25 = smov 80  }
  0x18   : > { %v159_v2 = vld [vmem:[#allocation2] sm:$0x3] }
  0x19   : > { %v161_v3 = vpack.c.bf16 %v159_v2, %v159_v2  ;;  %v208_v9 = vld [vmem:[#allocation3] sm:$0x3] }
  0x1b   : > { %310 = vmatmul.msk.bf16.vlgmr.msra.gmra.mxu0 %vm170_vm1, %v161_v3 }
  0x98   : > { %v183_v5 = vpop.f32.mrf.mxu0 }
  0x99   : > { %v187_v6 = vadd.f32 %v183_v5, %v160_v4 }
  0x9b   : > { %329 = vtanh.f32 %v187_v6  ;;  %v311_v10 = vmul.f32 -1.442695, %v187_v6 }
  0x9d   : > { %331 = vpow2.f32 %v311_v10 }
  0xa0   : > { %v185_v7 = vpop.f32.mrf.mxu0 }
  0xa1   : > { %v330_v8 = vpop.eup %329 }
  0xa2   : > { %215 = vrot.lane.b32.xlu0 %v330_v8, %s346_s21 }
  0xa3   : > { %v332_v11 = vpop.eup %331 }
  0xa4   : > { %v191_v12 = vadd.f32 1.0, %v332_v11 }
  0xa6   : > { %333 = vrcp.f32 %v191_v12  ;;  %v203_v18 = vand.u32 2147483648, %v191_v12  ;;  %vm197_vm3 = vweird.f32 %v191_v12  ;;  %v201_v19 = vand.u32 2147483647, %v191_v12 }
  0xa8   : > { %v204_v21 = vor.u32 1.1754944e-38, %v203_v18  ;;  %vm202_vm5 = vcmp.eq.f32.partialorder %v201_v19, 8.507059e+37 }
  0xaa   : > { %210 = vrot.lane.b32.xlu0 %v208_v9, %s347_s22 }
  0xac   : > { %v334_v13 = vpop.eup %333 }
  0xad   : > { %v193_v14 = vmul.f32 %v334_v13, %v191_v12  ;;  %vm198_vm2 = vweird.f32 %v334_v13 }
  0xae   : > { %vm199_vm4 = vmor %vm197_vm3, %vm198_vm2 }
  0xaf   : > { %v194_v15 = vsub.f32 1.0, %v193_v14 }
  0xb1   : > { %v195_v16 = vmul.f32 %v334_v13, %v194_v15 }
  0xb3   : > { %v196_v17 = vadd.f32 %v334_v13, %v195_v16 }
  0xb5   : > { %v200_v20 = vsel %vm199_vm4, %v334_v13, %v196_v17 }
  0xb6   : > { %v205_v23 = vsel %vm202_vm5, %v204_v21, %v200_v20 }
 0x114   : > { %v216_v22 = vpop.permute.xlu0 %215 }
 0x115   : > { %v218_v24 = vmul.f32 %v216_v22, %v205_v23 }
 0x117   : > { %220 = vrot.lane.b32.xlu1 %v218_v24, %s347_s22 }
 0x11c   : > { %v211_v25 = vpop.permute.xlu0 %210 }
 0x11d   : > { %v213_v26 = vmul.f32 %v211_v25, %v205_v23 }
 0x189   : > { %v221_v27 = vpop.permute.xlu1 %220 }
 0x18a   : > { %v223_v28 = vadd.f32 %v221_v27, %v213_v26 }
 0x18c   : > { %335 = vtanh.f32 %v223_v28  ;;  %231 = vrot.lane.b32.xlu2 %v223_v28, %s348_s23 }
 0x192   : > { %v336_v29 = vpop.eup %335 }
 0x193   : > { %226 = vrot.lane.b32.xlu1 %v336_v29, %s349_s24 }
 0x1e6   : > { %v232_v30 = vpop.permute.xlu2 %231 }
 0x1e7   : > { %235 = vst.msk [vmem:[#allocation3] sm:$0x3] %vm234_vm6, %v232_v30 }
 0x205   : > { %v227_v31 = vpop.permute.xlu1 %226 }
 0x206   : > { %v229_v32 = vmul.f32 %v227_v31, %v205_v23 }
 0x208   : > { %237 = vrot.lane.b32.xlu2 %v229_v32, %s350_s25 }
 0x262   : > { %v238_v33 = vpop.permute.xlu2 %237 }
 0x263   : > { %240 = vst.msk [vmem:[#allocation2] sm:$0x3] %vm234_vm6, %v238_v33 }
 0x264   : > { %241 = vst.msk [vmem:[%s380_s18] sm:$0x3] %vm234_vm6, %v238_v33 }
 0x265 PF: > { %s12_s9 = sadd.s32 1, %s343_s9  }
 0x266   : > { %p9_p5 = scmp.ge.s32.totalorder %s12_s9, 10  }
 0x268   :  { %11 = sbr.rel (!%p9_p5) target bundleno = 1 (0x1), region = 62 }

// kernel: custom-call.20
= control target key start
LH: loop header
LB: loop body
LE: loop exit
PB: predicated region body
PF: predicated region fallthrough
CT: control target
= control target key end

     0   :  { %s6_s0 = inlined_call_operand.vmem [shape: s32[7,2,5], index: 0, kind: output, shape index: {}]  }

// kernel: _lambda_.32
= control target key start
LH: loop header
LB: loop body
LE: loop exit
PB: predicated region body
PF: predicated region fallthrough
CT: control target
= control target key end

     0   :  { %vm16_vm0 = vcmask 261120   ;;  %v98_v4 = vmov 32.0   ;;  %vm82_vm6 = vcmask 257024   ;;  %s141_s0 = inlined_call_operand.vmem [shape: f32[16,32], index: 0, kind: input, shape index: {}]   ;;  %s142_s1 = inlined_call_operand.vmem [shape: f32[1,32], index: 1, kind: input, shape index: {}]   ;;  %s143_s2 = inlined_call_operand.vmem [shape: f32[1,32], index: 2, kind: input, shape index: {}]   ;;  %s144_s3 = inlined_call_operand.vmem [shape: bf16[16,32], index: 3, kind: output, shape index: {}]  }
   0x1   :  { %v14_v0 = vld [vmem:[%s141_s0] sm:$0xff]  ;;  %v15_v2 = vld [vmem:[%s141_s0 + $0x8] sm:$0xff]  ;;  %92 = vrcp.f32 %v98_v4 }
   0x2   :  { %v17_v1 = vsel %vm16_vm0, %v14_v0, 0.0  ;;  %v20_v3 = vsel %vm16_vm0, %v15_v2, 0.0  ;;  %v90_v35 = vld [vmem:[%s142_s1] ss:$0 sm:$0xff] }
   0x3   :  { %18 = vadd.xlane.f32.xlu0 %v17_v1  ;;  %v91_v38 = vld [vmem:[%s143_s2] ss:$0 sm:$0xff] }
   0x7   :  { %v93_v5 = vpop.eup %92 }
   0x8   :  { %v24_v6 = vmul.f32 32.0, %v93_v5  ;;  %vm28_vm1 = vweird.f32 %v93_v5 }
   0xa   :  { %v25_v7 = vsub.f32 1.0, %v24_v6 }
   0xb   :  { %21 = vadd.xlane.f32.xlu0 %v20_v3 }
   0xc   :  { %v26_v8 = vmul.f32 %v93_v5, %v25_v7 }
   0xe   :  { %v27_v9 = vadd.f32 %v93_v5, %v26_v8 }
  0x10   :  { %v29_v10 = vsel %vm28_vm1, %v93_v5, %v27_v9 }
  0x76   :  { %v19_v11 = vpop.xlane.xlu0 %18 }
  0x77   :  { %v30_v12 = vmul.f32 %v29_v10, %v19_v11 }
  0x79   :  { %v32_v13 = vsub.f32 %v14_v0, %v30_v12 }
  0x7b   :  { %v34_v14 = vmul.f32 %v32_v13, %v32_v13 }
  0x7d   :  { %v36_v15 = vsel %vm16_vm0, %v34_v14, 0.0 }
  0x7e   :  { %37 = vadd.xlane.f32.xlu1 %v36_v15  ;;  %v22_v16 = vpop.xlane.xlu0 %21 }
  0x7f   :  { %v31_v17 = vmul.f32 %v29_v10, %v22_v16 }
  0x81   :  { %v33_v18 = vsub.f32 %v15_v2, %v31_v17 }
  0x83   :  { %v35_v19 = vmul.f32 %v33_v18, %v33_v18 }
  0x85   :  { %v39_v20 = vsel %vm16_vm0, %v35_v19, 0.0 }
  0x86   :  { %40 = vadd.xlane.f32.xlu1 %v39_v20 }
  0xf1   :  { %v38_v21 = vpop.xlane.xlu1 %37 }
  0xf2   :  { %v42_v22 = vmul.f32 %v38_v21, %v29_v10 }
  0xf4   :  { %v44_v23 = vadd.f32 1e-05, %v42_v22 }
  0xf6   :  { %94 = vrsqrt.f32 %v44_v23  ;;  %vm52_vm3 = vweird.f32 %v44_v23 }
  0xf9   :  { %v41_v24 = vpop.xlane.xlu1 %40 }
  0xfa   :  { %v43_v25 = vmul.f32 %v41_v24, %v29_v10 }
  0xfc   :  { %v95_v26 = vpop.eup %94  ;;  %v45_v27 = vadd.f32 1e-05, %v43_v25 }
  0xfd   :  { %v47_v28 = vmul.f32 %v95_v26, %v44_v23  ;;  %vm53_vm2 = vweird.f32 %v95_v26 }
  0xfe   :  { %96 = vrsqrt.f32 %v45_v27  ;;  %vm54_vm4 = vmor %vm52_vm3, %vm53_vm2  ;;  %vm62_vm7 = vweird.f32 %v45_v27 }
  0xff   :  { %v48_v29 = vmul.f32 %v95_v26, %v47_v28 }
 0x101   :  { %v49_v30 = vmul.f32 0.5, %v48_v29 }
 0x103   :  { %v50_v31 = vsub.f32 1.5, %v49_v30 }
 0x104   :  { %v97_v32 = vpop.eup %96 }
 0x105   :  { %v51_v33 = vmul.f32 %v95_v26, %v50_v31  ;;  %v57_v34 = vmul.f32 %v97_v32, %v45_v27  ;;  %vm63_vm5 = vweird.f32 %v97_v32 }
 0x106   :  { %vm64_vm8 = vmor %vm62_vm7, %vm63_vm5 }
 0x107   :  { %v55_v36 = vsel %vm54_vm4, %v95_v26, %v51_v33  ;;  %v58_v37 = vmul.f32 %v97_v32, %v57_v34 }
 0x108   :  { %v66_v39 = vmul.f32 %v55_v36, %v32_v13 }
 0x109   :  { %v59_v40 = vmul.f32 0.5, %v58_v37 }
 0x10a   :  { %v72_v41 = vmul.f32 %v90_v35, %v66_v39 }
 0x10b   :  { %v60_v42 = vsub.f32 1.5, %v59_v40 }
 0x10c   :  { %v78_v43 = vadd.f32 %v91_v38, %v72_v41 }
 0x10d   :  { %v61_v44 = vmul.f32 %v97_v32, %v60_v42 }
 0x10e   :  { %v80_v45 = vpack.c.bf16 %v78_v43, %v78_v43 }
 0x10f   :  { %v65_v46 = vsel %vm64_vm8, %v97_v32, %v61_v44 }
 0x110   :  { %83 = vst.msk [vmem:[%s144_s3] sm:$0xf] %vm82_vm6, %v80_v45  ;;  %v67_v47 = vmul.f32 %v65_v46, %v33_v18 }
 0x112   :  { %v73_v48 = vmul.f32 %v90_v35, %v67_v47 }
 0x114   :  { %v79_v49 = vadd.f32 %v91_v38, %v73_v48 }
 0x116   :  { %v81_v50 = vpack.c.bf16 %v79_v49, %v79_v49 }
 0x118   :  { %84 = vst.msk [vmem:[%s144_s3 + $0x4] sm:$0xf] %vm82_vm6, %v81_v50 }

// kernel: _lambda_.33
= control target key start
LH: loop header
LB: loop body
LE: loop exit
PB: predicated region body
PF: predicated region fallthrough
CT: control target
= control target key end

     0   :  { %vm42_vm0 = vcmask 261120   ;;  %s121_s1 = inlined_call_operand.vmem [shape: bf16[32,128], index: 1, kind: input, shape index: {}]   ;;  %s122_s2 = inlined_call_operand.vmem [shape: f32[1,128], index: 2, kind: input, shape index: {}]   ;;  %s123_s0 = inlined_call_operand.vmem [shape: bf16[16,32], index: 0, kind: input, shape index: {}]   ;;  %s124_s3 = inlined_call_operand.vmem [shape: f32[16,128], index: 3, kind: output, shape index: {}]  }
   0x1   :  { %v81_v0 = vld [vmem:[%s121_s1 + $0x8] sm:$0xff]  ;;  %v80_v1 = vld [vmem:[%s121_s1] sm:$0xff] }
   0x2   :  { %52 = vmatpush.bf16.msra.mxu0 %v81_v0  ;;  %v79_v2 = vld [vmem:[%s123_s0] sm:$0xff] }
   0x3   :  { %v82_v3 = vld [vmem:[%s122_s2] ss:$0 sm:$0xff] }
   0x6   :  { %53 = vmatpush.bf16.msra.mxu0 %v80_v1 }
   0x9   :  { %78 = vmatmul.msk.bf16.vlgmr.msra.gmra.mxu0 %vm42_vm0, %v79_v2 }
  0x86   :  { %v55_v4 = vpop.f32.mrf.mxu0 }
  0x87   :  { %v56_v5 = vadd.f32 %v82_v3, %v55_v4 }
  0x89   :  { %60 = vst [vmem:[%s124_s3] sm:$0xff] %v56_v5 }
  0x8e   :  { %v57_v6 = vpop.f32.mrf.mxu0 }
  0x8f   :  { %v58_v7 = vadd.f32 %v82_v3, %v57_v6 }
  0x91   :  { %61 = vst [vmem:[%s124_s3 + $0x8] sm:$0xff] %v58_v7 }

</bundles_post_ra>
